<compile_context>
chip_gen: v7x
topology: tpu7x:2x2x1
jax: 0.10.0
libtpu: 0.0.40
codegen_flags: <defaults>
</compile_context>

<pallas_src>
import math

import jax
import jax.numpy as jnp
from jax.experimental import pallas as pl
from jax.experimental.pallas import tpu as pltpu

LANE = 128


def _round_up(x, m):
    return (x + m - 1) // m * m


# ----------------------------- Pallas kernels -----------------------------

def _conv_pool_relu_kernel(p_ref, w_ref, b_ref, o_ref):
    """Fused conv-as-GEMM + bias + 2x2 max-pool + ReLU.

    p_ref: (4, K, TM) bf16  - the 4 pooling-corner patch matrices
           (K = C*k*k ordered (c,di,dj); M ordered (n,py,px))
    w_ref: (OC, K)   bf16
    b_ref: (OC, 1)   f32
    o_ref: (OC, TM)  f32
    """
    w = w_ref[...]
    # 4 back-to-back MXU matmuls sharing the same LHS, then a pairwise max
    # tree on the f32 accumulators (VPU).
    d0 = jnp.dot(w, p_ref[0], preferred_element_type=jnp.float32)
    d1 = jnp.dot(w, p_ref[1], preferred_element_type=jnp.float32)
    d2 = jnp.dot(w, p_ref[2], preferred_element_type=jnp.float32)
    d3 = jnp.dot(w, p_ref[3], preferred_element_type=jnp.float32)
    acc = jnp.maximum(jnp.maximum(d0, d1), jnp.maximum(d2, d3))
    # max(conv+b) == max(conv)+b (bias uniform over the pool window);
    # relu(maxpool(.)) == maxpool(relu(.)) since ReLU is monotone.
    o_ref[...] = jnp.maximum(acc + b_ref[...], 0.0)


def _fc_loc_kernel(x_ref, w1_ref, b1_ref, w2_ref, b2_ref, o_ref):
    """theta = relu(x @ w1 + b1) @ w2 + b2, fused in one kernel."""
    h = jnp.dot(x_ref[...], w1_ref[...], preferred_element_type=jnp.float32)
    h = jnp.maximum(h + b1_ref[...], 0.0)
    o_ref[...] = (jnp.dot(h, w2_ref[...], preferred_element_type=jnp.float32)
                  + b2_ref[...])


def _classifier_head_kernel(x_ref, w1_ref, b1_ref, w2_ref, b2_ref, o_ref):
    """log_softmax(relu(x @ w1 + b1) @ w2 + b2), fused in one kernel."""
    h = jnp.dot(x_ref[...], w1_ref[...], preferred_element_type=jnp.float32)
    h = jnp.maximum(h + b1_ref[...], 0.0)
    logits = (jnp.dot(h, w2_ref[...], preferred_element_type=jnp.float32)
              + b2_ref[...])
    m = jnp.max(logits, axis=-1, keepdims=True)
    s = logits - m
    lse = jnp.log(jnp.sum(jnp.exp(s), axis=-1, keepdims=True))
    o_ref[...] = s - lse


# ----------------------------- kernel wrappers -----------------------------

def _pooled_corner_patches(x_cnhw, k):
    """x:(C,N,H,W) -> (4, C*k*k, N*Hp*Wp) transposed im2col patches, one per
    2x2 pooling corner, for a valid kxk conv (stride 1) then max_pool2d(2,2).
    K ordered (c, di, dj); M ordered (n, py, px); corners ordered (a, b)."""
    C, N, H, W = x_cnhw.shape
    Ho, Wo = H - k + 1, W - k + 1
    Hp, Wp = Ho // 2, Wo // 2
    shifts = []
    for di in range(k):
        for dj in range(k):
            shifts.append(x_cnhw[:, :, di:di + Ho, dj:dj + Wo])      # (C,N,Ho,Wo)
    pat = jnp.stack(shifts, axis=1).reshape(C * k * k, N, Ho, Wo)
    corners = [pat[:, :, a:a + 2 * Hp:2, b:b + 2 * Wp:2]             # (K,N,Hp,Wp)
               for a in range(2) for b in range(2)]
    pat4 = jnp.stack(corners, axis=0).reshape(4, C * k * k, N * Hp * Wp)
    return pat4, Hp, Wp


def conv_pool_relu(x_cnhw, w_ock, b_oc, *, k):
    """Fused conv(k, valid) + bias + max_pool2d(2,2) + ReLU.

    x_cnhw: (C, N, H, W); w_ock: (OC, C*k*k); b_oc: (OC,)
    returns (OC, N, Hp, Wp)  (channel-major activation layout).
    """
    C, N, H, W = x_cnhw.shape
    OC, K = w_ock.shape
    assert K == C * k * k
    pat4, Hp, Wp = _pooled_corner_patches(x_cnhw, k)
    Mp = N * Hp * Wp

    # Lane-pad the long M axis; tile it (512-wide, "parallel") only when large
    # so blocks stay well inside v7x's 64 MiB VMEM and can shard across its
    # two TensorCores.  At batch=2 every layer fits in a single block.
    if Mp <= 1024:
        mp_pad = _round_up(Mp, LANE)
        tm = mp_pad
    else:
        mp_pad = _round_up(Mp, 512)
        tm = 512
    grid_m = mp_pad // tm

    pat4 = jnp.pad(pat4, ((0, 0), (0, 0), (0, mp_pad - Mp)))
    pat4 = pat4.astype(jnp.bfloat16)      # bf16 MXU operands, f32 accumulation
    w_b = w_ock.astype(jnp.bfloat16)
    b2 = b_oc.reshape(OC, 1).astype(jnp.float32)

    cost = pl.CostEstimate(
        flops=2 * 4 * OC * K * mp_pad,
        transcendentals=0,
        bytes_accessed=(pat4.size * 2 + w_b.size * 2
                        + OC * mp_pad * 4 + OC * 4),
    )
    out = pl.pallas_call(
        _conv_pool_relu_kernel,
        out_shape=jax.ShapeDtypeStruct((OC, mp_pad), jnp.float32),
        grid=(grid_m,),
        in_specs=[
            pl.BlockSpec((4, K, tm), lambda i: (0, 0, i)),
            pl.BlockSpec((OC, K), lambda i: (0, 0)),
            pl.BlockSpec((OC, 1), lambda i: (0, 0)),
        ],
        out_specs=pl.BlockSpec((OC, tm), lambda i: (0, i)),
        compiler_params=pltpu.CompilerParams(
            dimension_semantics=("parallel",)),
        cost_estimate=cost,
    )(pat4, w_b, b2)
    return out[:, :Mp].reshape(OC, N, Hp, Wp)


def fused_mlp(kernel, x, w1, b1, w2, b2):
    """Two-layer MLP head (with kernel-specific epilogue) in one pallas_call."""
    M, K1 = x.shape
    _, Hd = w1.shape
    _, O = w2.shape
    return pl.pallas_call(
        kernel,
        out_shape=jax.ShapeDtypeStruct((M, O), jnp.float32),
        grid=(1,),
        in_specs=[
            pl.BlockSpec((M, K1), lambda i: (0, 0)),
            pl.BlockSpec((K1, Hd), lambda i: (0, 0)),
            pl.BlockSpec((1, Hd), lambda i: (0, 0)),
            pl.BlockSpec((Hd, O), lambda i: (0, 0)),
            pl.BlockSpec((1, O), lambda i: (0, 0)),
        ],
        out_specs=pl.BlockSpec((M, O), lambda i: (0, 0)),
        compiler_params=pltpu.CompilerParams(
            dimension_semantics=("arbitrary",)),
    )(x.astype(jnp.float32), w1, b1.reshape(1, -1), w2, b2.reshape(1, -1))


# ------------------------------ JAX glue ops -------------------------------

def affine_grid(theta, size):
    """F.affine_grid(theta, size, align_corners=False)."""
    N, C, H, W = size
    xs = (2.0 * jnp.arange(W, dtype=jnp.float32) + 1.0) / W - 1.0
    ys = (2.0 * jnp.arange(H, dtype=jnp.float32) + 1.0) / H - 1.0
    gy, gx = jnp.meshgrid(ys, xs, indexing="ij")            # (H,W)
    base = jnp.stack([gx, gy, jnp.ones_like(gx)], axis=-1)  # (H,W,3)
    grid = jnp.einsum("hwk,nok->nhwo", base, theta)         # (N,H,W,2)
    return grid


def grid_sample_bilinear(x, grid):
    """F.grid_sample(x, grid) bilinear, padding_mode='zeros', align_corners=False."""
    # TODO(synk): data-dependent 4-tap gather stays in plain JAX/XLA; a Pallas
    # version needs manual DMA gather (or an interpolation-matmul reformulation).
    N, C, H, W = x.shape
    gx = grid[..., 0]
    gy = grid[..., 1]
    ix = ((gx + 1.0) * W - 1.0) / 2.0
    iy = ((gy + 1.0) * H - 1.0) / 2.0
    ix0 = jnp.floor(ix)
    iy0 = jnp.floor(iy)
    wx = ix - ix0
    wy = iy - iy0
    flat = x.reshape(N, C, H * W)

    def sample(iy_, ix_):
        valid = (ix_ >= 0) & (ix_ <= W - 1) & (iy_ >= 0) & (iy_ <= H - 1)
        ixc = jnp.clip(ix_, 0, W - 1).astype(jnp.int32)
        iyc = jnp.clip(iy_, 0, H - 1).astype(jnp.int32)
        idx = (iyc * W + ixc).reshape(N, 1, -1)
        idx = jnp.broadcast_to(idx, (N, C, idx.shape[-1]))
        vals = jnp.take_along_axis(flat, idx, axis=2)
        vals = vals.reshape(N, C, ix_.shape[1], ix_.shape[2])
        return vals * valid[:, None, :, :].astype(x.dtype)

    v00 = sample(iy0, ix0)
    v01 = sample(iy0, ix0 + 1.0)
    v10 = sample(iy0 + 1.0, ix0)
    v11 = sample(iy0 + 1.0, ix0 + 1.0)
    wx = wx[:, None, :, :]
    wy = wy[:, None, :, :]
    return (v00 * (1 - wy) * (1 - wx) + v01 * (1 - wy) * wx
            + v10 * wy * (1 - wx) + v11 * wy * wx)


# ------------------------------ Model --------------------------------------

def init_params(key):
    def u(k, shape, fan_in):
        bound = 1.0 / math.sqrt(fan_in)
        return jax.random.uniform(k, shape, jnp.float32, -bound, bound)

    ks = jax.random.split(key, 14)
    p = {}
    # Conv weights stored as (out_c, in_c*k*k) == PyTorch (out_c,in_c,k,k).reshape
    p["loc_conv1_w"] = u(ks[0], (8, 1 * 7 * 7), 1 * 7 * 7)
    p["loc_conv1_b"] = u(ks[1], (8,), 1 * 7 * 7)
    p["loc_conv2_w"] = u(ks[2], (10, 8 * 5 * 5), 8 * 5 * 5)
    p["loc_conv2_b"] = u(ks[3], (10,), 8 * 5 * 5)
    # Linear weights stored pre-transposed as (in, out) == PyTorch weight.T
    p["fc_loc1_w"] = u(ks[4], (90, 32), 90)
    p["fc_loc1_b"] = u(ks[5], (32,), 90)
    p["fc_loc2_w"] = jnp.zeros((32, 6), jnp.float32)               # zeroed in __init__
    p["fc_loc2_b"] = jnp.array([1, 0, 0, 0, 1, 0], jnp.float32)    # identity transform
    p["conv1_w"] = u(ks[6], (10, 1 * 5 * 5), 1 * 5 * 5)
    p["conv1_b"] = u(ks[7], (10,), 1 * 5 * 5)
    p["conv2_w"] = u(ks[8], (20, 10 * 5 * 5), 10 * 5 * 5)
    p["conv2_b"] = u(ks[9], (20,), 10 * 5 * 5)
    p["fc1_w"] = u(ks[10], (320, 50), 320)
    p["fc1_b"] = u(ks[11], (50,), 320)
    p["fc2_w"] = u(ks[12], (50, 10), 50)
    p["fc2_b"] = u(ks[13], (10,), 50)
    return p


def stn(params, x_nchw):
    N = x_nchw.shape[0]
    x_c = x_nchw.transpose(1, 0, 2, 3)                                   # (1,N,28,28)
    xs = conv_pool_relu(x_c, params["loc_conv1_w"], params["loc_conv1_b"], k=7)   # (8,N,11,11)
    xs = conv_pool_relu(xs, params["loc_conv2_w"], params["loc_conv2_b"], k=5)    # (10,N,3,3)
    xs = xs.reshape(10, N, 9).transpose(1, 0, 2).reshape(N, 90)          # (c,y,x) flatten
    theta = fused_mlp(_fc_loc_kernel, xs,
                      params["fc_loc1_w"], params["fc_loc1_b"],
                      params["fc_loc2_w"], params["fc_loc2_b"])          # (N,6)
    theta = theta.reshape(N, 2, 3)
    grid = affine_grid(theta, x_nchw.shape)
    return grid_sample_bilinear(x_nchw, grid)


def forward(params, x):
    N = x.shape[0]
    xt = stn(params, x)                                                  # (N,1,28,28)
    xc = xt.transpose(1, 0, 2, 3)                                        # (1,N,28,28)
    h = conv_pool_relu(xc, params["conv1_w"], params["conv1_b"], k=5)    # (10,N,12,12)
    # conv_drop (Dropout2d) is identity in inference mode
    h = conv_pool_relu(h, params["conv2_w"], params["conv2_b"], k=5)     # (20,N,4,4)
    h = h.reshape(20, N, 16).transpose(1, 0, 2).reshape(N, 320)          # (c,y,x) flatten
    # F.dropout is identity in inference mode
    return fused_mlp(_classifier_head_kernel, h,
                     params["fc1_w"], params["fc1_b"],
                     params["fc2_w"], params["fc2_b"])                   # (N,10) log-probs


if __name__ == "__main__":
    key = jax.random.PRNGKey(0)
    pkey, xkey = jax.random.split(key)
    params = init_params(pkey)
    # batch=2, MNIST-sized input implied by fc_loc (10*3*3) and fc1 (320=20*4*4)
    x = jax.random.normal(xkey, (2, 1, 28, 28), jnp.float32)
    fwd = jax.jit(forward)
    out = jax.block_until_ready(fwd(params, x))
    assert out.shape == (2, 10)
    assert bool(jnp.all(jnp.isfinite(out)))
    print("KERNEL_OK")
</pallas_src>

<mosaic_0001>
module attributes {stable_mosaic.version = 11 : i64} {
  func.func private @main(%arg0: i32) attributes {dimension_semantics = [#tpu.dimension_semantics<core_parallel>], iteration_bounds = array<i64: 2>, tpu.core_type = #tpu.core_type<sc_scalar_subcore>, window_params = []} {
    return
  }
}

module attributes {stable_mosaic.version = 11 : i64} {
  func.func private @main(%arg0: i32) attributes {dimension_semantics = [#tpu.dimension_semantics<core_parallel>], iteration_bounds = array<i64: 2>, tpu.core_type = #tpu.core_type<sc_scalar_subcore>, window_params = []} {
    return
  }
}

module attributes {stable_mosaic.version = 11 : i64} {
  func.func @_conv_pool_relu_kernel(%arg0: i32, %arg1: memref<4x49x256xbf16, #tpu.memory_space<vmem>>, %arg2: memref<8x49xbf16, #tpu.memory_space<vmem>>, %arg3: memref<8x1xf32, #tpu.memory_space<vmem>>, %arg4: memref<8x256xf32, #tpu.memory_space<vmem>>) attributes {dimension_semantics = [#tpu.dimension_semantics<parallel>], iteration_bounds = array<i64: 1>, scalar_prefetch = 0 : i64, scratch_operands = 0 : i64, tpu.core_type = #tpu.core_type<tc>, window_params = [{transform_indices = @transform_0, window_bounds = array<i64: 4, 49, 256>}, {pipeline_mode = #tpu.pipeline_mode<synchronous>, transform_indices = @transform_1, window_bounds = array<i64: 8, 49>}, {pipeline_mode = #tpu.pipeline_mode<synchronous>, transform_indices = @transform_2, window_bounds = array<i64: 8, 1>}, {transform_indices = @transform_3, window_bounds = array<i64: 8, 256>}]} {
    %c0 = arith.constant 0 : index
    %c0_0 = arith.constant 0 : index
    %0 = vector.load %arg2[%c0, %c0_0] : memref<8x49xbf16, #tpu.memory_space<vmem>>, vector<8x49xbf16>
    %c0_1 = arith.constant 0 : index
    %c0_2 = arith.constant 0 : index
    %c0_3 = arith.constant 0 : index
    %1 = vector.load %arg1[%c0_1, %c0_2, %c0_3] : memref<4x49x256xbf16, #tpu.memory_space<vmem>>, vector<1x49x256xbf16>
    %2 = vector.shape_cast %1 : vector<1x49x256xbf16> to vector<49x256xbf16>
    %cst = arith.constant dense<0.000000e+00> : vector<8x256xf32>
    %3 = tpu.matmul %0, %2, %cst {dimension_numbers = #tpu.dot_dimension_numbers<[1], [0], [0], [1], [0, 0, 1, 1], [], []>} : vector<8x49xbf16>, vector<49x256xbf16>, vector<8x256xf32> -> vector<8x256xf32>
    %c1 = arith.constant 1 : index
    %c0_4 = arith.constant 0 : index
    %c0_5 = arith.constant 0 : index
    %4 = vector.load %arg1[%c1, %c0_4, %c0_5] : memref<4x49x256xbf16, #tpu.memory_space<vmem>>, vector<1x49x256xbf16>
    %5 = vector.shape_cast %4 : vector<1x49x256xbf16> to vector<49x256xbf16>
    %cst_6 = arith.constant dense<0.000000e+00> : vector<8x256xf32>
    %6 = tpu.matmul %0, %5, %cst_6 {dimension_numbers = #tpu.dot_dimension_numbers<[1], [0], [0], [1], [0, 0, 1, 1], [], []>} : vector<8x49xbf16>, vector<49x256xbf16>, vector<8x256xf32> -> vector<8x256xf32>
    %c2 = arith.constant 2 : index
    %c0_7 = arith.constant 0 : index
    %c0_8 = arith.constant 0 : index
    %7 = vector.load %arg1[%c2, %c0_7, %c0_8] : memref<4x49x256xbf16, #tpu.memory_space<vmem>>, vector<1x49x256xbf16>
    %8 = vector.shape_cast %7 : vector<1x49x256xbf16> to vector<49x256xbf16>
    %cst_9 = arith.constant dense<0.000000e+00> : vector<8x256xf32>
    %9 = tpu.matmul %0, %8, %cst_9 {dimension_numbers = #tpu.dot_dimension_numbers<[1], [0], [0], [1], [0, 0, 1, 1], [], []>} : vector<8x49xbf16>, vector<49x256xbf16>, vector<8x256xf32> -> vector<8x256xf32>
    %c3 = arith.constant 3 : index
    %c0_10 = arith.constant 0 : index
    %c0_11 = arith.constant 0 : index
    %10 = vector.load %arg1[%c3, %c0_10, %c0_11] : memref<4x49x256xbf16, #tpu.memory_space<vmem>>, vector<1x49x256xbf16>
    %11 = vector.shape_cast %10 : vector<1x49x256xbf16> to vector<49x256xbf16>
    %cst_12 = arith.constant dense<0.000000e+00> : vector<8x256xf32>
    %12 = tpu.matmul %0, %11, %cst_12 {dimension_numbers = #tpu.dot_dimension_numbers<[1], [0], [0], [1], [0, 0, 1, 1], [], []>} : vector<8x49xbf16>, vector<49x256xbf16>, vector<8x256xf32> -> vector<8x256xf32>
    %13 = arith.maximumf %3, %6 : vector<8x256xf32>
    %14 = arith.maximumf %9, %12 : vector<8x256xf32>
    %15 = arith.maximumf %13, %14 : vector<8x256xf32>
    %c0_13 = arith.constant 0 : index
    %c0_14 = arith.constant 0 : index
    %16 = vector.load %arg3[%c0_13, %c0_14] : memref<8x1xf32, #tpu.memory_space<vmem>>, vector<8x1xf32>
    %17 = vector.broadcast %16 : vector<8x1xf32> to vector<8x256xf32>
    %18 = arith.addf %15, %17 : vector<8x256xf32>
    %cst_15 = arith.constant 0.000000e+00 : f32
    %19 = vector.broadcast %cst_15 : f32 to vector<8x256xf32>
    %20 = arith.maximumf %18, %19 : vector<8x256xf32>
    %c0_16 = arith.constant 0 : index
    %c0_17 = arith.constant 0 : index
    %21 = vector.load %arg4[%c0_16, %c0_17] : memref<8x256xf32, #tpu.memory_space<vmem>>, vector<8x256xf32>
    tpu.vector_store %arg4[%c0_16, %c0_17], %20 {strides = array<i32>} : memref<8x256xf32, #tpu.memory_space<vmem>>, vector<8x256xf32>,
    return
  }
  func.func @transform_0(%arg0: i32) -> (i32, i32, i32) {
    %c0_i32 = arith.constant 0 : i32
    %c0_i32_0 = arith.constant 0 : i32
    %c0_i32_1 = arith.constant 0 : i32
    return %c0_i32, %c0_i32_0, %arg0 : i32, i32, i32
  }
  func.func @transform_1(%arg0: i32) -> (i32, i32) {
    %c0_i32 = arith.constant 0 : i32
    %c0_i32_0 = arith.constant 0 : i32
    %c0_i32_1 = arith.constant 0 : i32
    return %c0_i32, %c0_i32_0 : i32, i32
  }
  func.func @transform_2(%arg0: i32) -> (i32, i32) {
    %c0_i32 = arith.constant 0 : i32
    %c0_i32_0 = arith.constant 0 : i32
    %c0_i32_1 = arith.constant 0 : i32
    return %c0_i32, %c0_i32_0 : i32, i32
  }
  func.func @transform_3(%arg0: i32) -> (i32, i32) {
    %c0_i32 = arith.constant 0 : i32
    %c0_i32_0 = arith.constant 0 : i32
    return %c0_i32, %arg0 : i32, i32
  }
}

module attributes {stable_mosaic.version = 11 : i64} {
  func.func @_conv_pool_relu_kernel(%arg0: i32, %arg1: memref<4x200x128xbf16, #tpu.memory_space<vmem>>, %arg2: memref<10x200xbf16, #tpu.memory_space<vmem>>, %arg3: memref<10x1xf32, #tpu.memory_space<vmem>>, %arg4: memref<10x128xf32, #tpu.memory_space<vmem>>) attributes {dimension_semantics = [#tpu.dimension_semantics<parallel>], iteration_bounds = array<i64: 1>, scalar_prefetch = 0 : i64, scratch_operands = 0 : i64, tpu.core_type = #tpu.core_type<tc>, window_params = [{transform_indices = @transform_0, window_bounds = array<i64: 4, 200, 128>}, {pipeline_mode = #tpu.pipeline_mode<synchronous>, transform_indices = @transform_1, window_bounds = array<i64: 10, 200>}, {pipeline_mode = #tpu.pipeline_mode<synchronous>, transform_indices = @transform_2, window_bounds = array<i64: 10, 1>}, {transform_indices = @transform_3, window_bounds = array<i64: 10, 128>}]} {
    %c0 = arith.constant 0 : index
    %c0_0 = arith.constant 0 : index
    %0 = vector.load %arg2[%c0, %c0_0] : memref<10x200xbf16, #tpu.memory_space<vmem>>, vector<10x200xbf16>
    %c0_1 = arith.constant 0 : index
    %c0_2 = arith.constant 0 : index
    %c0_3 = arith.constant 0 : index
    %1 = vector.load %arg1[%c0_1, %c0_2, %c0_3] : memref<4x200x128xbf16, #tpu.memory_space<vmem>>, vector<1x200x128xbf16>
    %2 = vector.shape_cast %1 : vector<1x200x128xbf16> to vector<200x128xbf16>
    %cst = arith.constant dense<0.000000e+00> : vector<10x128xf32>
    %3 = tpu.matmul %0, %2, %cst {dimension_numbers = #tpu.dot_dimension_numbers<[1], [0], [0], [1], [0, 0, 1, 1], [], []>} : vector<10x200xbf16>, vector<200x128xbf16>, vector<10x128xf32> -> vector<10x128xf32>
    %c1 = arith.constant 1 : index
    %c0_4 = arith.constant 0 : index
    %c0_5 = arith.constant 0 : index
    %4 = vector.load %arg1[%c1, %c0_4, %c0_5] : memref<4x200x128xbf16, #tpu.memory_space<vmem>>, vector<1x200x128xbf16>
    %5 = vector.shape_cast %4 : vector<1x200x128xbf16> to vector<200x128xbf16>
    %cst_6 = arith.constant dense<0.000000e+00> : vector<10x128xf32>
    %6 = tpu.matmul %0, %5, %cst_6 {dimension_numbers = #tpu.dot_dimension_numbers<[1], [0], [0], [1], [0, 0, 1, 1], [], []>} : vector<10x200xbf16>, vector<200x128xbf16>, vector<10x128xf32> -> vector<10x128xf32>
    %c2 = arith.constant 2 : index
    %c0_7 = arith.constant 0 : index
    %c0_8 = arith.constant 0 : index
    %7 = vector.load %arg1[%c2, %c0_7, %c0_8] : memref<4x200x128xbf16, #tpu.memory_space<vmem>>, vector<1x200x128xbf16>
    %8 = vector.shape_cast %7 : vector<1x200x128xbf16> to vector<200x128xbf16>
    %cst_9 = arith.constant dense<0.000000e+00> : vector<10x128xf32>
    %9 = tpu.matmul %0, %8, %cst_9 {dimension_numbers = #tpu.dot_dimension_numbers<[1], [0], [0], [1], [0, 0, 1, 1], [], []>} : vector<10x200xbf16>, vector<200x128xbf16>, vector<10x128xf32> -> vector<10x128xf32>
    %c3 = arith.constant 3 : index
    %c0_10 = arith.constant 0 : index
    %c0_11 = arith.constant 0 : index
    %10 = vector.load %arg1[%c3, %c0_10, %c0_11] : memref<4x200x128xbf16, #tpu.memory_space<vmem>>, vector<1x200x128xbf16>
    %11 = vector.shape_cast %10 : vector<1x200x128xbf16> to vector<200x128xbf16>
    %cst_12 = arith.constant dense<0.000000e+00> : vector<10x128xf32>
    %12 = tpu.matmul %0, %11, %cst_12 {dimension_numbers = #tpu.dot_dimension_numbers<[1], [0], [0], [1], [0, 0, 1, 1], [], []>} : vector<10x200xbf16>, vector<200x128xbf16>, vector<10x128xf32> -> vector<10x128xf32>
    %13 = arith.maximumf %3, %6 : vector<10x128xf32>
    %14 = arith.maximumf %9, %12 : vector<10x128xf32>
    %15 = arith.maximumf %13, %14 : vector<10x128xf32>
    %c0_13 = arith.constant 0 : index
    %c0_14 = arith.constant 0 : index
    %16 = vector.load %arg3[%c0_13, %c0_14] : memref<10x1xf32, #tpu.memory_space<vmem>>, vector<10x1xf32>
    %17 = vector.broadcast %16 : vector<10x1xf32> to vector<10x128xf32>
    %18 = arith.addf %15, %17 : vector<10x128xf32>
    %cst_15 = arith.constant 0.000000e+00 : f32
    %19 = vector.broadcast %cst_15 : f32 to vector<10x128xf32>
    %20 = arith.maximumf %18, %19 : vector<10x128xf32>
    %c0_16 = arith.constant 0 : index
    %c0_17 = arith.constant 0 : index
    %21 = vector.load %arg4[%c0_16, %c0_17] : memref<10x128xf32, #tpu.memory_space<vmem>>, vector<10x128xf32>
    tpu.vector_store %arg4[%c0_16, %c0_17], %20 {strides = array<i32>} : memref<10x128xf32, #tpu.memory_space<vmem>>, vector<10x128xf32>,
    return
  }
  func.func @transform_0(%arg0: i32) -> (i32, i32, i32) {
    %c0_i32 = arith.constant 0 : i32
    %c0_i32_0 = arith.constant 0 : i32
    %c0_i32_1 = arith.constant 0 : i32
    return %c0_i32, %c0_i32_0, %arg0 : i32, i32, i32
  }
  func.func @transform_1(%arg0: i32) -> (i32, i32) {
    %c0_i32 = arith.constant 0 : i32
    %c0_i32_0 = arith.constant 0 : i32
    %c0_i32_1 = arith.constant 0 : i32
    return %c0_i32, %c0_i32_0 : i32, i32
  }
  func.func @transform_2(%arg0: i32) -> (i32, i32) {
    %c0_i32 = arith.constant 0 : i32
    %c0_i32_0 = arith.constant 0 : i32
    %c0_i32_1 = arith.constant 0 : i32
    return %c0_i32, %c0_i32_0 : i32, i32
  }
  func.func @transform_3(%arg0: i32) -> (i32, i32) {
    %c0_i32 = arith.constant 0 : i32
    %c0_i32_0 = arith.constant 0 : i32
    return %c0_i32, %arg0 : i32, i32
  }
}

module attributes {stable_mosaic.version = 11 : i64} {
  func.func @_fc_loc_kernel(%arg0: i32, %arg1: memref<2x90xf32, #tpu.memory_space<vmem>>, %arg2: memref<90x32xf32, #tpu.memory_space<vmem>>, %arg3: memref<1x32xf32, #tpu.memory_space<vmem>>, %arg4: memref<32x6xf32, #tpu.memory_space<vmem>>, %arg5: memref<1x6xf32, #tpu.memory_space<vmem>>, %arg6: memref<2x6xf32, #tpu.memory_space<vmem>>) attributes {dimension_semantics = [#tpu.dimension_semantics<arbitrary>], iteration_bounds = array<i64: 1>, scalar_prefetch = 0 : i64, scratch_operands = 0 : i64, tpu.core_type = #tpu.core_type<tc>, window_params = [{pipeline_mode = #tpu.pipeline_mode<synchronous>, transform_indices = @transform_0, window_bounds = array<i64: 2, 90>}, {pipeline_mode = #tpu.pipeline_mode<synchronous>, transform_indices = @transform_1, window_bounds = array<i64: 90, 32>}, {pipeline_mode = #tpu.pipeline_mode<synchronous>, transform_indices = @transform_2, window_bounds = array<i64: 1, 32>}, {pipeline_mode = #tpu.pipeline_mode<synchronous>, transform_indices = @transform_3, window_bounds = array<i64: 32, 6>}, {pipeline_mode = #tpu.pipeline_mode<synchronous>, transform_indices = @transform_4, window_bounds = array<i64: 1, 6>}, {pipeline_mode = #tpu.pipeline_mode<synchronous>, transform_indices = @transform_5, window_bounds = array<i64: 2, 6>}]} {
    %c0 = arith.constant 0 : index
    %c0_0 = arith.constant 0 : index
    %0 = vector.load %arg1[%c0, %c0_0] : memref<2x90xf32, #tpu.memory_space<vmem>>, vector<2x90xf32>
    %c0_1 = arith.constant 0 : index
    %c0_2 = arith.constant 0 : index
    %1 = vector.load %arg2[%c0_1, %c0_2] : memref<90x32xf32, #tpu.memory_space<vmem>>, vector<90x32xf32>
    %cst = arith.constant dense<0.000000e+00> : vector<2x32xf32>
    %2 = tpu.matmul %0, %1, %cst {dimension_numbers = #tpu.dot_dimension_numbers<[1], [0], [0], [1], [0, 0, 1, 1], [], []>} : vector<2x90xf32>, vector<90x32xf32>, vector<2x32xf32> -> vector<2x32xf32>
    %c0_3 = arith.constant 0 : index
    %c0_4 = arith.constant 0 : index
    %3 = vector.load %arg3[%c0_3, %c0_4] : memref<1x32xf32, #tpu.memory_space<vmem>>, vector<1x32xf32>
    %4 = vector.broadcast %3 : vector<1x32xf32> to vector<2x32xf32>
    %5 = arith.addf %2, %4 : vector<2x32xf32>
    %cst_5 = arith.constant 0.000000e+00 : f32
    %6 = vector.broadcast %cst_5 : f32 to vector<2x32xf32>
    %7 = arith.maximumf %5, %6 : vector<2x32xf32>
    %c0_6 = arith.constant 0 : index
    %c0_7 = arith.constant 0 : index
    %8 = vector.load %arg4[%c0_6, %c0_7] : memref<32x6xf32, #tpu.memory_space<vmem>>, vector<32x6xf32>
    %cst_8 = arith.constant dense<0.000000e+00> : vector<2x6xf32>
    %9 = tpu.matmul %7, %8, %cst_8 {dimension_numbers = #tpu.dot_dimension_numbers<[1], [0], [0], [1], [0, 0, 1, 1], [], []>} : vector<2x32xf32>, vector<32x6xf32>, vector<2x6xf32> -> vector<2x6xf32>
    %c0_9 = arith.constant 0 : index
    %c0_10 = arith.constant 0 : index
    %10 = vector.load %arg5[%c0_9, %c0_10] : memref<1x6xf32, #tpu.memory_space<vmem>>, vector<1x6xf32>
    %11 = vector.broadcast %10 : vector<1x6xf32> to vector<2x6xf32>
    %12 = arith.addf %9, %11 : vector<2x6xf32>
    %c0_11 = arith.constant 0 : index
    %c0_12 = arith.constant 0 : index
    %13 = vector.load %arg6[%c0_11, %c0_12] : memref<2x6xf32, #tpu.memory_space<vmem>>, vector<2x6xf32>
    tpu.vector_store %arg6[%c0_11, %c0_12], %12 {strides = array<i32>} : memref<2x6xf32, #tpu.memory_space<vmem>>, vector<2x6xf32>,
    return
  }
  func.func @transform_0(%arg0: i32) -> (i32, i32) {
    %c0_i32 = arith.constant 0 : i32
    %c0_i32_0 = arith.constant 0 : i32
    %c0_i32_1 = arith.constant 0 : i32
    return %c0_i32, %c0_i32_0 : i32, i32
  }
  func.func @transform_1(%arg0: i32) -> (i32, i32) {
    %c0_i32 = arith.constant 0 : i32
    %c0_i32_0 = arith.constant 0 : i32
    %c0_i32_1 = arith.constant 0 : i32
    return %c0_i32, %c0_i32_0 : i32, i32
  }
  func.func @transform_2(%arg0: i32) -> (i32, i32) {
    %c0_i32 = arith.constant 0 : i32
    %c0_i32_0 = arith.constant 0 : i32
    %c0_i32_1 = arith.constant 0 : i32
    return %c0_i32, %c0_i32_0 : i32, i32
  }
  func.func @transform_3(%arg0: i32) -> (i32, i32) {
    %c0_i32 = arith.constant 0 : i32
    %c0_i32_0 = arith.constant 0 : i32
    %c0_i32_1 = arith.constant 0 : i32
    return %c0_i32, %c0_i32_0 : i32, i32
  }
  func.func @transform_4(%arg0: i32) -> (i32, i32) {
    %c0_i32 = arith.constant 0 : i32
    %c0_i32_0 = arith.constant 0 : i32
    %c0_i32_1 = arith.constant 0 : i32
    return %c0_i32, %c0_i32_0 : i32, i32
  }
  func.func @transform_5(%arg0: i32) -> (i32, i32) {
    %c0_i32 = arith.constant 0 : i32
    %c0_i32_0 = arith.constant 0 : i32
    %c0_i32_1 = arith.constant 0 : i32
    return %c0_i32, %c0_i32_0 : i32, i32
  }
}

module attributes {stable_mosaic.version = 11 : i64} {
  func.func @_conv_pool_relu_kernel(%arg0: i32, %arg1: memref<4x25x384xbf16, #tpu.memory_space<vmem>>, %arg2: memref<10x25xbf16, #tpu.memory_space<vmem>>, %arg3: memref<10x1xf32, #tpu.memory_space<vmem>>, %arg4: memref<10x384xf32, #tpu.memory_space<vmem>>) attributes {dimension_semantics = [#tpu.dimension_semantics<parallel>], iteration_bounds = array<i64: 1>, scalar_prefetch = 0 : i64, scratch_operands = 0 : i64, tpu.core_type = #tpu.core_type<tc>, window_params = [{transform_indices = @transform_0, window_bounds = array<i64: 4, 25, 384>}, {pipeline_mode = #tpu.pipeline_mode<synchronous>, transform_indices = @transform_1, window_bounds = array<i64: 10, 25>}, {pipeline_mode = #tpu.pipeline_mode<synchronous>, transform_indices = @transform_2, window_bounds = array<i64: 10, 1>}, {transform_indices = @transform_3, window_bounds = array<i64: 10, 384>}]} {
    %c0 = arith.constant 0 : index
    %c0_0 = arith.constant 0 : index
    %0 = vector.load %arg2[%c0, %c0_0] : memref<10x25xbf16, #tpu.memory_space<vmem>>, vector<10x25xbf16>
    %c0_1 = arith.constant 0 : index
    %c0_2 = arith.constant 0 : index
    %c0_3 = arith.constant 0 : index
    %1 = vector.load %arg1[%c0_1, %c0_2, %c0_3] : memref<4x25x384xbf16, #tpu.memory_space<vmem>>, vector<1x25x384xbf16>
    %2 = vector.shape_cast %1 : vector<1x25x384xbf16> to vector<25x384xbf16>
    %cst = arith.constant dense<0.000000e+00> : vector<10x384xf32>
    %3 = tpu.matmul %0, %2, %cst {dimension_numbers = #tpu.dot_dimension_numbers<[1], [0], [0], [1], [0, 0, 1, 1], [], []>} : vector<10x25xbf16>, vector<25x384xbf16>, vector<10x384xf32> -> vector<10x384xf32>
    %c1 = arith.constant 1 : index
    %c0_4 = arith.constant 0 : index
    %c0_5 = arith.constant 0 : index
    %4 = vector.load %arg1[%c1, %c0_4, %c0_5] : memref<4x25x384xbf16, #tpu.memory_space<vmem>>, vector<1x25x384xbf16>
    %5 = vector.shape_cast %4 : vector<1x25x384xbf16> to vector<25x384xbf16>
    %cst_6 = arith.constant dense<0.000000e+00> : vector<10x384xf32>
    %6 = tpu.matmul %0, %5, %cst_6 {dimension_numbers = #tpu.dot_dimension_numbers<[1], [0], [0], [1], [0, 0, 1, 1], [], []>} : vector<10x25xbf16>, vector<25x384xbf16>, vector<10x384xf32> -> vector<10x384xf32>
    %c2 = arith.constant 2 : index
    %c0_7 = arith.constant 0 : index
    %c0_8 = arith.constant 0 : index
    %7 = vector.load %arg1[%c2, %c0_7, %c0_8] : memref<4x25x384xbf16, #tpu.memory_space<vmem>>, vector<1x25x384xbf16>
    %8 = vector.shape_cast %7 : vector<1x25x384xbf16> to vector<25x384xbf16>
    %cst_9 = arith.constant dense<0.000000e+00> : vector<10x384xf32>
    %9 = tpu.matmul %0, %8, %cst_9 {dimension_numbers = #tpu.dot_dimension_numbers<[1], [0], [0], [1], [0, 0, 1, 1], [], []>} : vector<10x25xbf16>, vector<25x384xbf16>, vector<10x384xf32> -> vector<10x384xf32>
    %c3 = arith.constant 3 : index
    %c0_10 = arith.constant 0 : index
    %c0_11 = arith.constant 0 : index
    %10 = vector.load %arg1[%c3, %c0_10, %c0_11] : memref<4x25x384xbf16, #tpu.memory_space<vmem>>, vector<1x25x384xbf16>
    %11 = vector.shape_cast %10 : vector<1x25x384xbf16> to vector<25x384xbf16>
    %cst_12 = arith.constant dense<0.000000e+00> : vector<10x384xf32>
    %12 = tpu.matmul %0, %11, %cst_12 {dimension_numbers = #tpu.dot_dimension_numbers<[1], [0], [0], [1], [0, 0, 1, 1], [], []>} : vector<10x25xbf16>, vector<25x384xbf16>, vector<10x384xf32> -> vector<10x384xf32>
    %13 = arith.maximumf %3, %6 : vector<10x384xf32>
    %14 = arith.maximumf %9, %12 : vector<10x384xf32>
    %15 = arith.maximumf %13, %14 : vector<10x384xf32>
    %c0_13 = arith.constant 0 : index
    %c0_14 = arith.constant 0 : index
    %16 = vector.load %arg3[%c0_13, %c0_14] : memref<10x1xf32, #tpu.memory_space<vmem>>, vector<10x1xf32>
    %17 = vector.broadcast %16 : vector<10x1xf32> to vector<10x384xf32>
    %18 = arith.addf %15, %17 : vector<10x384xf32>
    %cst_15 = arith.constant 0.000000e+00 : f32
    %19 = vector.broadcast %cst_15 : f32 to vector<10x384xf32>
    %20 = arith.maximumf %18, %19 : vector<10x384xf32>
    %c0_16 = arith.constant 0 : index
    %c0_17 = arith.constant 0 : index
    %21 = vector.load %arg4[%c0_16, %c0_17] : memref<10x384xf32, #tpu.memory_space<vmem>>, vector<10x384xf32>
    tpu.vector_store %arg4[%c0_16, %c0_17], %20 {strides = array<i32>} : memref<10x384xf32, #tpu.memory_space<vmem>>, vector<10x384xf32>,
    return
  }
  func.func @transform_0(%arg0: i32) -> (i32, i32, i32) {
    %c0_i32 = arith.constant 0 : i32
    %c0_i32_0 = arith.constant 0 : i32
    %c0_i32_1 = arith.constant 0 : i32
    return %c0_i32, %c0_i32_0, %arg0 : i32, i32, i32
  }
  func.func @transform_1(%arg0: i32) -> (i32, i32) {
    %c0_i32 = arith.constant 0 : i32
    %c0_i32_0 = arith.constant 0 : i32
    %c0_i32_1 = arith.constant 0 : i32
    return %c0_i32, %c0_i32_0 : i32, i32
  }
  func.func @transform_2(%arg0: i32) -> (i32, i32) {
    %c0_i32 = arith.constant 0 : i32
    %c0_i32_0 = arith.constant 0 : i32
    %c0_i32_1 = arith.constant 0 : i32
    return %c0_i32, %c0_i32_0 : i32, i32
  }
  func.func @transform_3(%arg0: i32) -> (i32, i32) {
    %c0_i32 = arith.constant 0 : i32
    %c0_i32_0 = arith.constant 0 : i32
    return %c0_i32, %arg0 : i32, i32
  }
}

module attributes {stable_mosaic.version = 11 : i64} {
  func.func @_conv_pool_relu_kernel(%arg0: i32, %arg1: memref<4x250x128xbf16, #tpu.memory_space<vmem>>, %arg2: memref<20x250xbf16, #tpu.memory_space<vmem>>, %arg3: memref<20x1xf32, #tpu.memory_space<vmem>>, %arg4: memref<20x128xf32, #tpu.memory_space<vmem>>) attributes {dimension_semantics = [#tpu.dimension_semantics<parallel>], iteration_bounds = array<i64: 1>, scalar_prefetch = 0 : i64, scratch_operands = 0 : i64, tpu.core_type = #tpu.core_type<tc>, window_params = [{transform_indices = @transform_0, window_bounds = array<i64: 4, 250, 128>}, {pipeline_mode = #tpu.pipeline_mode<synchronous>, transform_indices = @transform_1, window_bounds = array<i64: 20, 250>}, {pipeline_mode = #tpu.pipeline_mode<synchronous>, transform_indices = @transform_2, window_bounds = array<i64: 20, 1>}, {transform_indices = @transform_3, window_bounds = array<i64: 20, 128>}]} {
    %c0 = arith.constant 0 : index
    %c0_0 = arith.constant 0 : index
    %0 = vector.load %arg2[%c0, %c0_0] : memref<20x250xbf16, #tpu.memory_space<vmem>>, vector<20x250xbf16>
    %c0_1 = arith.constant 0 : index
    %c0_2 = arith.constant 0 : index
    %c0_3 = arith.constant 0 : index
    %1 = vector.load %arg1[%c0_1, %c0_2, %c0_3] : memref<4x250x128xbf16, #tpu.memory_space<vmem>>, vector<1x250x128xbf16>
    %2 = vector.shape_cast %1 : vector<1x250x128xbf16> to vector<250x128xbf16>
    %cst = arith.constant dense<0.000000e+00> : vector<20x128xf32>
    %3 = tpu.matmul %0, %2, %cst {dimension_numbers = #tpu.dot_dimension_numbers<[1], [0], [0], [1], [0, 0, 1, 1], [], []>} : vector<20x250xbf16>, vector<250x128xbf16>, vector<20x128xf32> -> vector<20x128xf32>
    %c1 = arith.constant 1 : index
    %c0_4 = arith.constant 0 : index
    %c0_5 = arith.constant 0 : index
    %4 = vector.load %arg1[%c1, %c0_4, %c0_5] : memref<4x250x128xbf16, #tpu.memory_space<vmem>>, vector<1x250x128xbf16>
    %5 = vector.shape_cast %4 : vector<1x250x128xbf16> to vector<250x128xbf16>
    %cst_6 = arith.constant dense<0.000000e+00> : vector<20x128xf32>
    %6 = tpu.matmul %0, %5, %cst_6 {dimension_numbers = #tpu.dot_dimension_numbers<[1], [0], [0], [1], [0, 0, 1, 1], [], []>} : vector<20x250xbf16>, vector<250x128xbf16>, vector<20x128xf32> -> vector<20x128xf32>
    %c2 = arith.constant 2 : index
    %c0_7 = arith.constant 0 : index
    %c0_8 = arith.constant 0 : index
    %7 = vector.load %arg1[%c2, %c0_7, %c0_8] : memref<4x250x128xbf16, #tpu.memory_space<vmem>>, vector<1x250x128xbf16>
    %8 = vector.shape_cast %7 : vector<1x250x128xbf16> to vector<250x128xbf16>
    %cst_9 = arith.constant dense<0.000000e+00> : vector<20x128xf32>
    %9 = tpu.matmul %0, %8, %cst_9 {dimension_numbers = #tpu.dot_dimension_numbers<[1], [0], [0], [1], [0, 0, 1, 1], [], []>} : vector<20x250xbf16>, vector<250x128xbf16>, vector<20x128xf32> -> vector<20x128xf32>
    %c3 = arith.constant 3 : index
    %c0_10 = arith.constant 0 : index
    %c0_11 = arith.constant 0 : index
    %10 = vector.load %arg1[%c3, %c0_10, %c0_11] : memref<4x250x128xbf16, #tpu.memory_space<vmem>>, vector<1x250x128xbf16>
    %11 = vector.shape_cast %10 : vector<1x250x128xbf16> to vector<250x128xbf16>
    %cst_12 = arith.constant dense<0.000000e+00> : vector<20x128xf32>
    %12 = tpu.matmul %0, %11, %cst_12 {dimension_numbers = #tpu.dot_dimension_numbers<[1], [0], [0], [1], [0, 0, 1, 1], [], []>} : vector<20x250xbf16>, vector<250x128xbf16>, vector<20x128xf32> -> vector<20x128xf32>
    %13 = arith.maximumf %3, %6 : vector<20x128xf32>
    %14 = arith.maximumf %9, %12 : vector<20x128xf32>
    %15 = arith.maximumf %13, %14 : vector<20x128xf32>
    %c0_13 = arith.constant 0 : index
    %c0_14 = arith.constant 0 : index
    %16 = vector.load %arg3[%c0_13, %c0_14] : memref<20x1xf32, #tpu.memory_space<vmem>>, vector<20x1xf32>
    %17 = vector.broadcast %16 : vector<20x1xf32> to vector<20x128xf32>
    %18 = arith.addf %15, %17 : vector<20x128xf32>
    %cst_15 = arith.constant 0.000000e+00 : f32
    %19 = vector.broadcast %cst_15 : f32 to vector<20x128xf32>
    %20 = arith.maximumf %18, %19 : vector<20x128xf32>
    %c0_16 = arith.constant 0 : index
    %c0_17 = arith.constant 0 : index
    %21 = vector.load %arg4[%c0_16, %c0_17] : memref<20x128xf32, #tpu.memory_space<vmem>>, vector<20x128xf32>
    tpu.vector_store %arg4[%c0_16, %c0_17], %20 {strides = array<i32>} : memref<20x128xf32, #tpu.memory_space<vmem>>, vector<20x128xf32>,
    return
  }
  func.func @transform_0(%arg0: i32) -> (i32, i32, i32) {
    %c0_i32 = arith.constant 0 : i32
    %c0_i32_0 = arith.constant 0 : i32
    %c0_i32_1 = arith.constant 0 : i32
    return %c0_i32, %c0_i32_0, %arg0 : i32, i32, i32
  }
  func.func @transform_1(%arg0: i32) -> (i32, i32) {
    %c0_i32 = arith.constant 0 : i32
    %c0_i32_0 = arith.constant 0 : i32
    %c0_i32_1 = arith.constant 0 : i32
    return %c0_i32, %c0_i32_0 : i32, i32
  }
  func.func @transform_2(%arg0: i32) -> (i32, i32) {
    %c0_i32 = arith.constant 0 : i32
    %c0_i32_0 = arith.constant 0 : i32
    %c0_i32_1 = arith.constant 0 : i32
    return %c0_i32, %c0_i32_0 : i32, i32
  }
  func.func @transform_3(%arg0: i32) -> (i32, i32) {
    %c0_i32 = arith.constant 0 : i32
    %c0_i32_0 = arith.constant 0 : i32
    return %c0_i32, %arg0 : i32, i32
  }
}

module attributes {stable_mosaic.version = 11 : i64} {
  func.func @_classifier_head_kernel(%arg0: i32, %arg1: memref<2x320xf32, #tpu.memory_space<vmem>>, %arg2: memref<320x50xf32, #tpu.memory_space<vmem>>, %arg3: memref<1x50xf32, #tpu.memory_space<vmem>>, %arg4: memref<50x10xf32, #tpu.memory_space<vmem>>, %arg5: memref<1x10xf32, #tpu.memory_space<vmem>>, %arg6: memref<2x10xf32, #tpu.memory_space<vmem>>) attributes {dimension_semantics = [#tpu.dimension_semantics<arbitrary>], iteration_bounds = array<i64: 1>, scalar_prefetch = 0 : i64, scratch_operands = 0 : i64, tpu.core_type = #tpu.core_type<tc>, window_params = [{pipeline_mode = #tpu.pipeline_mode<synchronous>, transform_indices = @transform_0, window_bounds = array<i64: 2, 320>}, {pipeline_mode = #tpu.pipeline_mode<synchronous>, transform_indices = @transform_1, window_bounds = array<i64: 320, 50>}, {pipeline_mode = #tpu.pipeline_mode<synchronous>, transform_indices = @transform_2, window_bounds = array<i64: 1, 50>}, {pipeline_mode = #tpu.pipeline_mode<synchronous>, transform_indices = @transform_3, window_bounds = array<i64: 50, 10>}, {pipeline_mode = #tpu.pipeline_mode<synchronous>, transform_indices = @transform_4, window_bounds = array<i64: 1, 10>}, {pipeline_mode = #tpu.pipeline_mode<synchronous>, transform_indices = @transform_5, window_bounds = array<i64: 2, 10>}]} {
    %c0 = arith.constant 0 : index
    %c0_0 = arith.constant 0 : index
    %0 = vector.load %arg1[%c0, %c0_0] : memref<2x320xf32, #tpu.memory_space<vmem>>, vector<2x320xf32>
    %c0_1 = arith.constant 0 : index
    %c0_2 = arith.constant 0 : index
    %1 = vector.load %arg2[%c0_1, %c0_2] : memref<320x50xf32, #tpu.memory_space<vmem>>, vector<320x50xf32>
    %cst = arith.constant dense<0.000000e+00> : vector<2x50xf32>
    %2 = tpu.matmul %0, %1, %cst {dimension_numbers = #tpu.dot_dimension_numbers<[1], [0], [0], [1], [0, 0, 1, 1], [], []>} : vector<2x320xf32>, vector<320x50xf32>, vector<2x50xf32> -> vector<2x50xf32>
    %c0_3 = arith.constant 0 : index
    %c0_4 = arith.constant 0 : index
    %3 = vector.load %arg3[%c0_3, %c0_4] : memref<1x50xf32, #tpu.memory_space<vmem>>, vector<1x50xf32>
    %4 = vector.broadcast %3 : vector<1x50xf32> to vector<2x50xf32>
    %5 = arith.addf %2, %4 : vector<2x50xf32>
    %cst_5 = arith.constant 0.000000e+00 : f32
    %6 = vector.broadcast %cst_5 : f32 to vector<2x50xf32>
    %7 = arith.maximumf %5, %6 : vector<2x50xf32>
    %c0_6 = arith.constant 0 : index
    %c0_7 = arith.constant 0 : index
    %8 = vector.load %arg4[%c0_6, %c0_7] : memref<50x10xf32, #tpu.memory_space<vmem>>, vector<50x10xf32>
    %cst_8 = arith.constant dense<0.000000e+00> : vector<2x10xf32>
    %9 = tpu.matmul %7, %8, %cst_8 {dimension_numbers = #tpu.dot_dimension_numbers<[1], [0], [0], [1], [0, 0, 1, 1], [], []>} : vector<2x50xf32>, vector<50x10xf32>, vector<2x10xf32> -> vector<2x10xf32>
    %c0_9 = arith.constant 0 : index
    %c0_10 = arith.constant 0 : index
    %10 = vector.load %arg5[%c0_9, %c0_10] : memref<1x10xf32, #tpu.memory_space<vmem>>, vector<1x10xf32>
    %11 = vector.broadcast %10 : vector<1x10xf32> to vector<2x10xf32>
    %12 = arith.addf %9, %11 : vector<2x10xf32>
    %cst_11 = arith.constant dense<0xFF800000> : vector<2xf32>
    %13 = vector.multi_reduction <maximumf>, %12, %cst_11 [1] : vector<2x10xf32> to vector<2xf32>
    %14 = vector.shape_cast %13 : vector<2xf32> to vector<2x1xf32>
    %15 = vector.broadcast %14 : vector<2x1xf32> to vector<2x10xf32>
    %16 = arith.subf %12, %15 : vector<2x10xf32>
    %17 = math.exp %16 : vector<2x10xf32>
    %cst_12 = arith.constant dense<0.000000e+00> : vector<2xf32>
    %18 = vector.multi_reduction <add>, %17, %cst_12 [1] : vector<2x10xf32> to vector<2xf32>
    %19 = vector.shape_cast %18 : vector<2xf32> to vector<2x1xf32>
    %20 = math.log %19 : vector<2x1xf32>
    %21 = vector.broadcast %20 : vector<2x1xf32> to vector<2x10xf32>
    %22 = arith.subf %16, %21 : vector<2x10xf32>
    %c0_13 = arith.constant 0 : index
    %c0_14 = arith.constant 0 : index
    %23 = vector.load %arg6[%c0_13, %c0_14] : memref<2x10xf32, #tpu.memory_space<vmem>>, vector<2x10xf32>
    tpu.vector_store %arg6[%c0_13, %c0_14], %22 {strides = array<i32>} : memref<2x10xf32, #tpu.memory_space<vmem>>, vector<2x10xf32>,
    return
  }
  func.func @transform_0(%arg0: i32) -> (i32, i32) {
    %c0_i32 = arith.constant 0 : i32
    %c0_i32_0 = arith.constant 0 : i32
    %c0_i32_1 = arith.constant 0 : i32
    return %c0_i32, %c0_i32_0 : i32, i32
  }
  func.func @transform_1(%arg0: i32) -> (i32, i32) {
    %c0_i32 = arith.constant 0 : i32
    %c0_i32_0 = arith.constant 0 : i32
    %c0_i32_1 = arith.constant 0 : i32
    return %c0_i32, %c0_i32_0 : i32, i32
  }
  func.func @transform_2(%arg0: i32) -> (i32, i32) {
    %c0_i32 = arith.constant 0 : i32
    %c0_i32_0 = arith.constant 0 : i32
    %c0_i32_1 = arith.constant 0 : i32
    return %c0_i32, %c0_i32_0 : i32, i32
  }
  func.func @transform_3(%arg0: i32) -> (i32, i32) {
    %c0_i32 = arith.constant 0 : i32
    %c0_i32_0 = arith.constant 0 : i32
    %c0_i32_1 = arith.constant 0 : i32
    return %c0_i32, %c0_i32_0 : i32, i32
  }
  func.func @transform_4(%arg0: i32) -> (i32, i32) {
    %c0_i32 = arith.constant 0 : i32
    %c0_i32_0 = arith.constant 0 : i32
    %c0_i32_1 = arith.constant 0 : i32
    return %c0_i32, %c0_i32_0 : i32, i32
  }
  func.func @transform_5(%arg0: i32) -> (i32, i32) {
    %c0_i32 = arith.constant 0 : i32
    %c0_i32_0 = arith.constant 0 : i32
    %c0_i32_1 = arith.constant 0 : i32
    return %c0_i32, %c0_i32_0 : i32, i32
  }
}

</mosaic_0001>

<bundles_post_ra>
// kernel: forward.6
= control target key start
LH: loop header
LB: loop body
LE: loop exit
PB: predicated region body
PF: predicated region fallthrough
CT: control target
= control target key end

     0   :  { %v507_v1 = vmov 0   ;;  %vm62_vm0 = vcmask 1040384   ;;  %vm58_vm1 = vcmask 400384   ;;  %s644_s0 = inlined_call_operand.vmem [shape: bf16[4,49,256], index: 0, kind: input, shape index: {}]   ;;  %s645_s1 = inlined_call_operand.vmem [shape: bf16[8,49], index: 1, kind: input, shape index: {}]   ;;  %s646_s2 = inlined_call_operand.vmem [shape: f32[8,1], index: 2, kind: input, shape index: {}]   ;;  %s647_s3 = inlined_call_operand.vmem [shape: f32[8,256], index: 3, kind: output, shape index: {}]  }
   0x1   :  { %v463_v0 = vld [vmem:[%s644_s0 + $0x4] ss:$8 sps:$4 sm:$0xff]   ;;  %103 = vmatprep.mubr.bf16.mxu0 %v507_v1  ;;  %193 = vmatprep.mubr.bf16.mxu1 %v507_v1  ;;  %v467_v3 = vld [vmem:[%s644_s0] ss:$8 sps:$4 sm:$0xff]   ;;  %v469_v5 = vld [vmem:[%s644_s0 + $0x14] ss:$8 sps:$4 sm:$0xff]  }
   0x2   :  { %v465_v2 = vld [vmem:[%s644_s0 + $0x3c] ss:$8 sps:$4 sm:$0xff]   ;;  %462 = vset.pattern.permute.xlu0 %v507_v1  ;;  %71 = vmatprep.subr.bf16.mxu0 %v463_v0  ;;  %v468_v4 = vld [vmem:[%s644_s0 + $0x38] ss:$8 sps:$4 sm:$0xff]   ;;  %v471_v6 = vld [vmem:[%s644_s0 + $0x4c] ss:$8 sps:$4 sm:$0xff]  }
   0x3   :  { %161 = vmatprep.subr.bf16.mxu1 %v465_v2  ;;  %72 = vmatpush1.bf16.msra.mxu0 %v467_v3  ;;  %v473_v7 = vld [vmem:[%s644_s0 + $0x10] ss:$8 sps:$4 sm:$0xff]   ;;  %v475_v9 = vld [vmem:[%s644_s0 + $0x24] ss:$8 sps:$4 sm:$0xff]   ;;  %v479_v11 = vld [vmem:[%s644_s0 + $0x20] ss:$8 sps:$4 sm:$0xff]  }
   0x4   :  { %162 = vmatpush1.bf16.msra.mxu1 %v468_v4  ;;  %73 = vmatprep.subr.bf16.mxu0 %v469_v5  ;;  %v474_v8 = vld [vmem:[%s644_s0 + $0x48] ss:$8 sps:$4 sm:$0xff]   ;;  %v477_v10 = vld [vmem:[%s644_s0 + $0x5c] ss:$8 sps:$4 sm:$0xff]   ;;  %v565_v12 = vsel %vm62_vm0, 65535, %v507_v1 }
   0x5   :  { %163 = vmatprep.subr.bf16.mxu1 %v471_v6  ;;  %v480_v13 = vld [vmem:[%s644_s0 + $0x58] ss:$8 sps:$4 sm:$0xff]   ;;  %v22_v14 = vld [vmem:[%s644_s0 + $0x30] sm:$0x11]  ;;  %v419_v15 = vld [vmem:[%s644_s0 + $0x68] sm:$0x11] }
   0x6   :  { %v411_v16 = vcombine.high %v22_v14, %v22_v14  ;;  %v427_v17 = vcombine.high %v419_v15, %v419_v15  ;;  %v410_v18 = vcombine.low %v22_v14, %v22_v14  ;;  %v426_v19 = vcombine.low %v419_v15, %v419_v15  ;;  %v487_v24 = vld [vmem:[%s644_s0 + $0x74] ss:$8 sps:$4 sm:$0xff]   ;;  %v15_v26 = vld [vmem:[%s645_s1] sm:$0xf]  ;;  %v485_v27 = vld [vmem:[%s644_s0 + $0x70] ss:$8 sps:$4 sm:$0xff]  }
   0x7   :  { %74 = vmatpush1.bf16.msra.mxu0 %v473_v7  ;;  %v490_v25 = vld [vmem:[%s644_s0 + $0xac] ss:$8 sps:$4 sm:$0xff]   ;;  %v488_v28 = vld [vmem:[%s644_s0 + $0xa8] ss:$8 sps:$4 sm:$0xff]   ;;  %v496_v30 = vld [vmem:[%s644_s0 + $0xbc] ss:$8 sps:$4 sm:$0xff]  }
   0x8   :  { %164 = vmatpush1.bf16.msra.mxu1 %v474_v8  ;;  %75 = vmatprep.subr.bf16.mxu0 %v475_v9  ;;  %v69_v20 = vand.u32 %v411_v16, %v565_v12  ;;  %v159_v21 = vand.u32 %v427_v17, %v565_v12  ;;  %v66_v22 = vand.u32 %v410_v18, %v565_v12  ;;  %v493_v29 = vld [vmem:[%s644_s0 + $0x84] ss:$8 sps:$4 sm:$0xff]   ;;  %v451_v33 = vld [vmem:[%s644_s0 + $0xd8] sm:$0x11]  ;;  %v491_v34 = vld [vmem:[%s644_s0 + $0x80] ss:$8 sps:$4 sm:$0xff]  }
   0x9   :  { %165 = vmatprep.subr.bf16.mxu1 %v477_v10  ;;  %v156_v23 = vand.u32 %v426_v19, %v565_v12  ;;  %v388_v31 = vld [vmem:[%s646_s2] sm:$0xff]  ;;  %v499_v36 = vld [vmem:[%s644_s0 + $0x94] ss:$8 sps:$4 sm:$0xff]   ;;  %v459_v39 = vcombine.high %v451_v33, %v451_v33  ;;  %v497_v40 = vld [vmem:[%s644_s0 + $0x90] ss:$8 sps:$4 sm:$0xff]   ;;  %v458_v43 = vcombine.low %v451_v33, %v451_v33 }
   0xa   :  { %v435_v32 = vld [vmem:[%s644_s0 + $0xa0] sm:$0x11]  ;;  %391 = vperm.xlu0 %462, %v388_v31   ;;  %v502_v37 = vld [vmem:[%s644_s0 + $0xcc] ss:$8 sps:$4 sm:$0xff]   ;;  %v500_v41 = vld [vmem:[%s644_s0 + $0xc8] ss:$8 sps:$4 sm:$0xff]  }
   0xb   :  { %76 = vmatpush1.bf16.msra.mxu0 %v479_v11  ;;  %v494_v35 = vld [vmem:[%s644_s0 + $0xb8] ss:$8 sps:$4 sm:$0xff]   ;;  %v443_v38 = vcombine.high %v435_v32, %v435_v32  ;;  %v442_v42 = vcombine.low %v435_v32, %v435_v32  ;;  %v339_v45 = vand.u32 %v459_v39, %v565_v12  ;;  %v336_v47 = vand.u32 %v458_v43, %v565_v12 }
   0xc   :  { %166 = vmatpush1.bf16.msra.mxu1 %v480_v13  ;;  %77 = vmatprep.subr.bf16.mxu0 %v69_v20 }
   0xd   :  { %167 = vmatprep.subr.bf16.mxu1 %v159_v21  ;;  %v249_v44 = vand.u32 %v443_v38, %v565_v12  ;;  %v246_v46 = vand.u32 %v442_v42, %v565_v12 }
   0xf   :  { %78 = vmatpush1.bf16.msra.mxu0 %v66_v22 }
  0x10   :  { %168 = vmatpush1.bf16.msra.mxu1 %v156_v23  ;;  %251 = vmatprep.subr.bf16.mxu0 %v487_v24 }
  0x11   :  { %341 = vmatprep.subr.bf16.mxu1 %v490_v25 }
  0x12   :  { %412 = vmatmul.mubr.msk.bf16.vlgmr.msra.gmra.mrb[0].mxu0 %vm58_vm1, %v15_v26 }
  0x13   :  { %428 = vmatmul.mubr.msk.bf16.vlgmr.msra.gmra.mrb[0].mxu1 %vm58_vm1, %v15_v26  ;;  %252 = vmatpush1.bf16.msra.mxu0 %v485_v27 }
  0x14   :  { %342 = vmatpush1.bf16.msra.mxu1 %v488_v28  ;;  %253 = vmatprep.subr.bf16.mxu0 %v493_v29 }
  0x15   :  { %343 = vmatprep.subr.bf16.mxu1 %v496_v30  ;;  %283 = vmatprep.mubr.bf16.mxu0 %v507_v1 }
  0x16   :  { %373 = vmatprep.mubr.bf16.mxu1 %v507_v1 }
  0x17   :  { %254 = vmatpush1.bf16.msra.mxu0 %v491_v34 }
  0x18   :  { %344 = vmatpush1.bf16.msra.mxu1 %v494_v35  ;;  %255 = vmatprep.subr.bf16.mxu0 %v499_v36 }
  0x19   :  { %345 = vmatprep.subr.bf16.mxu1 %v502_v37 }
  0x1b   :  { %256 = vmatpush1.bf16.msra.mxu0 %v497_v40 }
  0x1c   :  { %346 = vmatpush1.bf16.msra.mxu1 %v500_v41  ;;  %257 = vmatprep.subr.bf16.mxu0 %v249_v44 }
  0x1d   :  { %347 = vmatprep.subr.bf16.mxu1 %v339_v45 }
  0x1f   :  { %258 = vmatpush1.bf16.msra.mxu0 %v246_v46 }
  0x20   :  { %348 = vmatpush1.bf16.msra.mxu1 %v336_v47 }
  0x22   :  { %444 = vmatmul.mubr.msk.bf16.vlgmr.msra.gmra.mrb[4].mxu0 %vm58_vm1, %v15_v26 }
  0x23   :  { %460 = vmatmul.mubr.msk.bf16.vlgmr.msra.gmra.mrb[4].mxu1 %vm58_vm1, %v15_v26 }
  0x89   :  { %v392_v58 = vpop.permute.xlu0 %391 }
  0xe5   :  { %v105_v48 = vpop.f32.mrb[0].mxu0 }
  0xe6   :  { %v195_v49 = vpop.f32.mrb[0].mxu1  ;;  %v107_v51 = vpop.f32.mrb[1].mxu0 }
  0xe7   :  { %v382_v50 = vmax.f32 %v105_v48, %v195_v49  ;;  %v197_v52 = vpop.f32.mrb[1].mxu1  ;;  %v109_v54 = vpop.f32.mrb[2].mxu0 }
  0xe8   :  { %v383_v53 = vmax.f32 %v107_v51, %v197_v52  ;;  %v199_v55 = vpop.f32.mrb[2].mxu1  ;;  %v110_v56 = vpop.f32.mrb[3].mxu0 }
  0xe9   :  { %v200_v57 = vpop.f32.mrb[3].mxu1 }
  0xf5   :  { %v285_v59 = vpop.f32.mrb[4].mxu0 }
  0xf6   :  { %v375_v60 = vpop.f32.mrb[4].mxu1  ;;  %v287_v62 = vpop.f32.mrb[5].mxu0 }
  0xf7   :  { %v384_v61 = vmax.f32 %v285_v59, %v375_v60  ;;  %v377_v63 = vpop.f32.mrb[5].mxu1  ;;  %v289_v1 = vpop.f32.mrb[6].mxu0 }
  0xf8   :  { %v385_v0 = vmax.f32 %v287_v62, %v377_v63  ;;  %v379_v2 = vpop.f32.mrb[6].mxu1  ;;  %v290_v3 = vpop.f32.mrb[7].mxu0 }
  0xf9   :  { %v380_v4 = vpop.f32.mrb[7].mxu1  ;;  %v386_v5 = vmax.f32 %v382_v50, %v384_v61 }
  0xfa   :  { %v387_v6 = vmax.f32 %v383_v53, %v385_v0 }
  0xfb   :  { %v394_v7 = vadd.f32 %v392_v58, %v386_v5 }
  0xfc   :  { %v395_v8 = vadd.f32 %v392_v58, %v387_v6 }
  0xfd   :  { %v396_v9 = vmax.f32 %v394_v7, 0.0 }
  0xfe   :  { %v397_v10 = vmax.f32 %v395_v8, 0.0 }
  0xff   :  { %398 = vst [vmem:[%s647_s3] sm:$0xff] %v396_v9 }
 0x100   :  { %399 = vst [vmem:[%s647_s3 + $0x8] sm:$0xff] %v397_v10 }

// kernel: forward.7
= control target key start
LH: loop header
LB: loop body
LE: loop exit
PB: predicated region body
PF: predicated region fallthrough
CT: control target
= control target key end

     0   :  { %v828_v0 = vmov 0   ;;  %vm126_vm0 = vcmask 588800   ;;  %vm130_vm1 = vcmask 1043456   ;;  %s1090_s0 = inlined_call_operand.vmem [shape: bf16[4,200,128], index: 0, kind: input, shape index: {}]   ;;  %s1091_s1 = inlined_call_operand.vmem [shape: bf16[10,200], index: 1, kind: input, shape index: {}]   ;;  %s1092_s2 = inlined_call_operand.vmem [shape: f32[10,1], index: 2, kind: input, shape index: {}]   ;;  %s1093_s3 = inlined_call_operand.vmem [shape: f32[10,128], index: 3, kind: output, shape index: {}]  }
   0x1   :  { %134 = vmatprep.subr.bf16.mxu0 %v828_v0  ;;  %279 = vmatprep.subr.bf16.mxu1 %v828_v0  ;;  %v773_v1 = vld [vmem:[%s1090_s0] sm:$0xff]   ;;  %v775_v3 = vld [vmem:[%s1090_s0 + $0x8] sm:$0xff]   ;;  %v777_v5 = vld [vmem:[%s1090_s0 + $0x10] sm:$0xff]  }
   0x2   :  { %v774_v2 = vld [vmem:[%s1090_s0 + $0x64] sm:$0xff]   ;;  %772 = vset.pattern.permute.xlu0 %v828_v0  ;;  %135 = vmatpush1.bf16.msra.mxu0 %v773_v1  ;;  %v776_v4 = vld [vmem:[%s1090_s0 + $0x6c] sm:$0xff]   ;;  %v778_v6 = vld [vmem:[%s1090_s0 + $0x74] sm:$0xff]  }
   0x3   :  { %280 = vmatpush1.bf16.msra.mxu1 %v774_v2  ;;  %136 = vmatprep.subr.bf16.mxu0 %v828_v0  ;;  %v779_v7 = vld [vmem:[%s1090_s0 + $0x18] sm:$0xff]   ;;  %v781_v9 = vld [vmem:[%s1090_s0 + $0x20] sm:$0xff]   ;;  %v783_v11 = vld [vmem:[%s1090_s0 + $0x28] sm:$0xff]  }
   0x4   :  { %281 = vmatprep.subr.bf16.mxu1 %v828_v0  ;;  %v780_v8 = vld [vmem:[%s1090_s0 + $0x7c] sm:$0xff]   ;;  %v782_v10 = vld [vmem:[%s1090_s0 + $0x84] sm:$0xff]   ;;  %v784_v12 = vld [vmem:[%s1090_s0 + $0x8c] sm:$0xff]  }
   0x5   :  { %v785_v13 = vld [vmem:[%s1090_s0 + $0x30] sm:$0xff]   ;;  %v787_v15 = vld [vmem:[%s1090_s0 + $0x38] sm:$0xff]   ;;  %v799_v16 = vld [vmem:[%s1091_s1 + $0x4] ss:$8 sps:$4 sm:$0x1f]  }
   0x6   :  { %137 = vmatpush1.bf16.msra.mxu0 %v775_v3  ;;  %v786_v14 = vld [vmem:[%s1090_s0 + $0x94] sm:$0xff]   ;;  %v788_v17 = vld [vmem:[%s1090_s0 + $0x9c] sm:$0xff]   ;;  %653 = vmatprep.mubr.msk.bf16.mxu0 %vm126_vm0, %v799_v16  ;;  %v790_v19 = vld [vmem:[%s1090_s0 + $0xa4] sm:$0xff]  }
   0x7   :  { %282 = vmatpush1.bf16.msra.mxu1 %v776_v4  ;;  %138 = vmatprep.subr.bf16.mxu0 %v828_v0  ;;  %v789_v18 = vld [vmem:[%s1090_s0 + $0x40] sm:$0xff]   ;;  %v791_v20 = vld [vmem:[%s1090_s0 + $0x48] sm:$0xff]   ;;  %v793_v22 = vld [vmem:[%s1090_s0 + $0x50] sm:$0xff]  }
   0x8   :  { %283 = vmatprep.subr.bf16.mxu1 %v828_v0  ;;  %692 = vmatprep.mubr.msk.bf16.mxu1 %vm126_vm0, %v799_v16  ;;  %v792_v21 = vld [vmem:[%s1090_s0 + $0xac] sm:$0xff]   ;;  %v794_v23 = vld [vmem:[%s1090_s0 + $0xb4] sm:$0xff]   ;;  %v796_v25 = vld [vmem:[%s1090_s0 + $0xbc] sm:$0xff]  }
   0x9   :  { %v795_v24 = vld [vmem:[%s1090_s0 + $0x58] sm:$0xff]   ;;  %v797_v26 = vld [vmem:[%s1090_s0 + $0x60] ss:$0 sps:$4 sm:$0xff]   ;;  %v798_v27 = vld [vmem:[%s1090_s0 + $0xc4] ss:$0 sps:$4 sm:$0xff]  }
   0xa   :  { %139 = vmatpush1.bf16.msra.mxu0 %v777_v5  ;;  %v132_v28 = vsel %vm130_vm1, %v797_v26, 0  ;;  %v962_v29 = vld [vmem:[%s1091_s1] ss:$8 sps:$4 sm:$0x1f]   ;;  %v277_v30 = vsel %vm130_vm1, %v798_v27, 0  ;;  %v803_v32 = vld [vmem:[%s1090_s0 + $0x12c] sm:$0xff]  }
   0xb   :  { %284 = vmatpush1.bf16.msra.mxu1 %v778_v6  ;;  %140 = vmatprep.subr.bf16.mxu0 %v828_v0  ;;  %v802_v31 = vld [vmem:[%s1090_s0 + $0xc8] sm:$0xff]   ;;  %v616_v33 = vld [vmem:[%s1092_s2] sm:$0xff]  ;;  %v804_v34 = vld [vmem:[%s1090_s0 + $0xd0] sm:$0xff]  }
   0xc   :  { %285 = vmatprep.subr.bf16.mxu1 %v828_v0  ;;  %620 = vperm.xlu0 %772, %v616_v33   ;;  %v617_v35 = vld [vmem:[%s1092_s2 + $0x8] sm:$0x3]  ;;  %v805_v36 = vld [vmem:[%s1090_s0 + $0x134] sm:$0xff]   ;;  %v807_v38 = vld [vmem:[%s1090_s0 + $0x13c] sm:$0xff]  }
   0xd   :  { %v806_v37 = vld [vmem:[%s1090_s0 + $0xd8] sm:$0xff]   ;;  %v808_v39 = vld [vmem:[%s1090_s0 + $0xe0] sm:$0xff]   ;;  %v810_v41 = vld [vmem:[%s1090_s0 + $0xe8] sm:$0xff]  }
   0xe   :  { %141 = vmatpush1.bf16.msra.mxu0 %v779_v7  ;;  %v809_v40 = vld [vmem:[%s1090_s0 + $0x144] sm:$0xff]   ;;  %v811_v42 = vld [vmem:[%s1090_s0 + $0x14c] sm:$0xff]   ;;  %v813_v44 = vld [vmem:[%s1090_s0 + $0x154] sm:$0xff]  }
   0xf   :  { %286 = vmatpush1.bf16.msra.mxu1 %v780_v8  ;;  %142 = vmatprep.subr.bf16.mxu0 %v828_v0  ;;  %v812_v43 = vld [vmem:[%s1090_s0 + $0xf0] sm:$0xff]   ;;  %v814_v45 = vld [vmem:[%s1090_s0 + $0xf8] sm:$0xff]   ;;  %v816_v47 = vld [vmem:[%s1090_s0 + $0x100] sm:$0xff]  }
  0x10   :  { %287 = vmatprep.subr.bf16.mxu1 %v828_v0  ;;  %625 = vperm.xlu0 %772, %v617_v35   ;;  %v815_v46 = vld [vmem:[%s1090_s0 + $0x15c] sm:$0xff]   ;;  %v817_v48 = vld [vmem:[%s1090_s0 + $0x164] sm:$0xff]   ;;  %v819_v50 = vld [vmem:[%s1090_s0 + $0x16c] sm:$0xff]  }
  0x11   :  { %v818_v49 = vld [vmem:[%s1090_s0 + $0x108] sm:$0xff]   ;;  %v820_v51 = vld [vmem:[%s1090_s0 + $0x110] sm:$0xff]   ;;  %v822_v53 = vld [vmem:[%s1090_s0 + $0x118] sm:$0xff]  }
  0x12   :  { %143 = vmatpush1.bf16.msra.mxu0 %v781_v9  ;;  %v821_v52 = vld [vmem:[%s1090_s0 + $0x174] sm:$0xff]   ;;  %v823_v54 = vld [vmem:[%s1090_s0 + $0x17c] sm:$0xff]   ;;  %v825_v56 = vld [vmem:[%s1090_s0 + $0x184] sm:$0xff]  }
  0x13   :  { %288 = vmatpush1.bf16.msra.mxu1 %v782_v10  ;;  %144 = vmatprep.subr.bf16.mxu0 %v828_v0  ;;  %v824_v55 = vld [vmem:[%s1090_s0 + $0x120] sm:$0xff]   ;;  %v826_v57 = vld [vmem:[%s1090_s0 + $0x128] ss:$0 sps:$4 sm:$0xff]   ;;  %v827_v58 = vld [vmem:[%s1090_s0 + $0x18c] ss:$0 sps:$4 sm:$0xff]  }
  0x14   :  { %289 = vmatprep.subr.bf16.mxu1 %v828_v0  ;;  %v422_v59 = vsel %vm130_vm1, %v826_v57, 0  ;;  %v567_v60 = vsel %vm130_vm1, %v827_v58, 0 }
  0x16   :  { %145 = vmatpush1.bf16.msra.mxu0 %v783_v11 }
  0x17   :  { %290 = vmatpush1.bf16.msra.mxu1 %v784_v12  ;;  %146 = vmatprep.subr.bf16.mxu0 %v828_v0 }
  0x18   :  { %291 = vmatprep.subr.bf16.mxu1 %v828_v0 }
  0x1a   :  { %147 = vmatpush1.bf16.msra.mxu0 %v785_v13 }
  0x1b   :  { %292 = vmatpush1.bf16.msra.mxu1 %v786_v14  ;;  %148 = vmatprep.subr.bf16.mxu0 %v828_v0 }
  0x1c   :  { %293 = vmatprep.subr.bf16.mxu1 %v828_v0 }
  0x1e   :  { %149 = vmatpush1.bf16.msra.mxu0 %v787_v15 }
  0x1f   :  { %294 = vmatpush1.bf16.msra.mxu1 %v788_v17  ;;  %150 = vmatprep.subr.bf16.mxu0 %v828_v0 }
  0x20   :  { %295 = vmatprep.subr.bf16.mxu1 %v828_v0 }
  0x22   :  { %151 = vmatpush1.bf16.msra.mxu0 %v789_v18 }
  0x23   :  { %296 = vmatpush1.bf16.msra.mxu1 %v790_v19  ;;  %152 = vmatprep.subr.bf16.mxu0 %v828_v0 }
  0x24   :  { %297 = vmatprep.subr.bf16.mxu1 %v828_v0 }
  0x26   :  { %153 = vmatpush1.bf16.msra.mxu0 %v791_v20 }
  0x27   :  { %298 = vmatpush1.bf16.msra.mxu1 %v792_v21  ;;  %154 = vmatprep.subr.bf16.mxu0 %v828_v0 }
  0x28   :  { %299 = vmatprep.subr.bf16.mxu1 %v828_v0 }
  0x2a   :  { %155 = vmatpush1.bf16.msra.mxu0 %v793_v22 }
  0x2b   :  { %300 = vmatpush1.bf16.msra.mxu1 %v794_v23  ;;  %156 = vmatprep.subr.bf16.mxu0 %v828_v0 }
  0x2c   :  { %301 = vmatprep.subr.bf16.mxu1 %v828_v0 }
  0x2e   :  { %157 = vmatpush1.bf16.msra.mxu0 %v795_v24 }
  0x2f   :  { %302 = vmatpush1.bf16.msra.mxu1 %v796_v25  ;;  %158 = vmatprep.subr.bf16.mxu0 %v828_v0 }
  0x30   :  { %303 = vmatprep.subr.bf16.mxu1 %v828_v0 }
  0x32   :  { %159 = vmatpush1.bf16.msra.mxu0 %v132_v28 }
  0x33   :  { %304 = vmatpush1.bf16.msra.mxu1 %v277_v30  ;;  %424 = vmatprep.subr.bf16.mxu0 %v828_v0 }
  0x34   :  { %569 = vmatprep.subr.bf16.mxu1 %v828_v0 }
  0x35   :  { %167 = vmatmul.mubr.bf16.vlgmr.msra.gmra.mrb[0].mxu0 %v962_v29 }
  0x36   :  { %312 = vmatmul.mubr.bf16.vlgmr.msra.gmra.mrb[0].mxu1 %v962_v29  ;;  %425 = vmatpush1.bf16.msra.mxu0 %v802_v31 }
  0x37   :  { %570 = vmatpush1.bf16.msra.mxu1 %v803_v32  ;;  %426 = vmatprep.subr.bf16.mxu0 %v828_v0 }
  0x38   :  { %571 = vmatprep.subr.bf16.mxu1 %v828_v0  ;;  %731 = vmatprep.mubr.msk.bf16.mxu0 %vm126_vm0, %v799_v16 }
  0x39   :  { %770 = vmatprep.mubr.msk.bf16.mxu1 %vm126_vm0, %v799_v16 }
  0x3a   :  { %427 = vmatpush1.bf16.msra.mxu0 %v804_v34 }
  0x3b   :  { %572 = vmatpush1.bf16.msra.mxu1 %v805_v36  ;;  %428 = vmatprep.subr.bf16.mxu0 %v828_v0 }
  0x3c   :  { %573 = vmatprep.subr.bf16.mxu1 %v828_v0 }
  0x3e   :  { %429 = vmatpush1.bf16.msra.mxu0 %v806_v37 }
  0x3f   :  { %574 = vmatpush1.bf16.msra.mxu1 %v807_v38  ;;  %430 = vmatprep.subr.bf16.mxu0 %v828_v0 }
  0x40   :  { %575 = vmatprep.subr.bf16.mxu1 %v828_v0 }
  0x42   :  { %431 = vmatpush1.bf16.msra.mxu0 %v808_v39 }
  0x43   :  { %576 = vmatpush1.bf16.msra.mxu1 %v809_v40  ;;  %432 = vmatprep.subr.bf16.mxu0 %v828_v0 }
  0x44   :  { %577 = vmatprep.subr.bf16.mxu1 %v828_v0 }
  0x46   :  { %433 = vmatpush1.bf16.msra.mxu0 %v810_v41 }
  0x47   :  { %578 = vmatpush1.bf16.msra.mxu1 %v811_v42  ;;  %434 = vmatprep.subr.bf16.mxu0 %v828_v0 }
  0x48   :  { %579 = vmatprep.subr.bf16.mxu1 %v828_v0 }
  0x4a   :  { %435 = vmatpush1.bf16.msra.mxu0 %v812_v43 }
  0x4b   :  { %580 = vmatpush1.bf16.msra.mxu1 %v813_v44  ;;  %436 = vmatprep.subr.bf16.mxu0 %v828_v0 }
  0x4c   :  { %581 = vmatprep.subr.bf16.mxu1 %v828_v0 }
  0x4e   :  { %437 = vmatpush1.bf16.msra.mxu0 %v814_v45 }
  0x4f   :  { %582 = vmatpush1.bf16.msra.mxu1 %v815_v46  ;;  %438 = vmatprep.subr.bf16.mxu0 %v828_v0 }
  0x50   :  { %583 = vmatprep.subr.bf16.mxu1 %v828_v0 }
  0x52   :  { %439 = vmatpush1.bf16.msra.mxu0 %v816_v47 }
  0x53   :  { %584 = vmatpush1.bf16.msra.mxu1 %v817_v48  ;;  %440 = vmatprep.subr.bf16.mxu0 %v828_v0 }
  0x54   :  { %585 = vmatprep.subr.bf16.mxu1 %v828_v0 }
  0x56   :  { %441 = vmatpush1.bf16.msra.mxu0 %v818_v49 }
  0x57   :  { %586 = vmatpush1.bf16.msra.mxu1 %v819_v50  ;;  %442 = vmatprep.subr.bf16.mxu0 %v828_v0 }
  0x58   :  { %587 = vmatprep.subr.bf16.mxu1 %v828_v0 }
  0x5a   :  { %443 = vmatpush1.bf16.msra.mxu0 %v820_v51 }
  0x5b   :  { %588 = vmatpush1.bf16.msra.mxu1 %v821_v52  ;;  %444 = vmatprep.subr.bf16.mxu0 %v828_v0 }
  0x5c   :  { %589 = vmatprep.subr.bf16.mxu1 %v828_v0 }
  0x5e   :  { %445 = vmatpush1.bf16.msra.mxu0 %v822_v53 }
  0x5f   :  { %590 = vmatpush1.bf16.msra.mxu1 %v823_v54  ;;  %446 = vmatprep.subr.bf16.mxu0 %v828_v0 }
  0x60   :  { %591 = vmatprep.subr.bf16.mxu1 %v828_v0 }
  0x62   :  { %447 = vmatpush1.bf16.msra.mxu0 %v824_v55 }
  0x63   :  { %592 = vmatpush1.bf16.msra.mxu1 %v825_v56  ;;  %448 = vmatprep.subr.bf16.mxu0 %v828_v0 }
  0x64   :  { %593 = vmatprep.subr.bf16.mxu1 %v828_v0 }
  0x66   :  { %449 = vmatpush1.bf16.msra.mxu0 %v422_v59 }
  0x67   :  { %594 = vmatpush1.bf16.msra.mxu1 %v567_v60 }
  0x69   :  { %457 = vmatmul.mubr.bf16.vlgmr.msra.gmra.mrb[4].mxu0 %v962_v29 }
  0x6a   :  { %602 = vmatmul.mubr.bf16.vlgmr.msra.gmra.mrb[4].mxu1 %v962_v29 }
  0x8b   :  { %v621_v8 = vpop.permute.xlu0 %620 }
  0x8f   :  { %v626_v21 = vpop.permute.xlu0 %625 }
 0x108   :  { %v168_v61 = vpop.f32.mrb[0].mxu0 }
 0x109   :  { %v313_v62 = vpop.f32.mrb[0].mxu1  ;;  %v170_v63 = vpop.f32.mrb[1].mxu0 }
 0x10a   :  { %v610_v1 = vmax.f32 %v168_v61, %v313_v62  ;;  %v315_v2 = vpop.f32.mrb[1].mxu1  ;;  %v171_v3 = vpop.f32.mrb[2].mxu0 }
 0x10b   :  { %v316_v4 = vpop.f32.mrb[2].mxu1  ;;  %v173_v5 = vpop.f32.mrb[3].mxu0 }
 0x10c   :  { %v611_v6 = vmax.f32 %v171_v3, %v316_v4  ;;  %v318_v7 = vpop.f32.mrb[3].mxu1 }
 0x13c   :  { %v458_v0 = vpop.f32.mrb[4].mxu0 }
 0x13d   :  { %v603_v9 = vpop.f32.mrb[4].mxu1  ;;  %v460_v10 = vpop.f32.mrb[5].mxu0 }
 0x13e   :  { %v612_v11 = vmax.f32 %v458_v0, %v603_v9  ;;  %v605_v12 = vpop.f32.mrb[5].mxu1  ;;  %v461_v13 = vpop.f32.mrb[6].mxu0 }
 0x13f   :  { %v606_v14 = vpop.f32.mrb[6].mxu1  ;;  %v463_v15 = vpop.f32.mrb[7].mxu0 }
 0x140   :  { %v614_v16 = vmax.f32 %v610_v1, %v612_v11  ;;  %v613_v17 = vmax.f32 %v461_v13, %v606_v14  ;;  %v608_v18 = vpop.f32.mrb[7].mxu1 }
 0x142   :  { %v628_v19 = vadd.f32 %v621_v8, %v614_v16  ;;  %v615_v20 = vmax.f32 %v611_v6, %v613_v17 }
 0x144   :  { %v630_v22 = vmax.f32 %v628_v19, 0.0  ;;  %v629_v23 = vadd.f32 %v626_v21, %v615_v20 }
 0x146   :  { %632 = vst [vmem:[%s1093_s3] sm:$0xff] %v630_v22  ;;  %v631_v24 = vmax.f32 %v629_v23, 0.0 }
 0x148   :  { %633 = vst [vmem:[%s1093_s3 + $0x8] sm:$0x3] %v631_v24 }

// kernel: forward.8
= control target key start
LH: loop header
LB: loop body
LE: loop exit
PB: predicated region body
PF: predicated region fallthrough
CT: control target
= control target key end

     0   :  { %v300_v0 = vmov 0.0|0.0   ;;  %vm301_vm0 = vmmov 0   ;;  %v302_v6 = vmov 0.0   ;;  %vm44_vm1 = vcmask 1041408   ;;  %s394_s1 = inlined_call_operand.vmem [shape: f32[90,32], index: 1, kind: input, shape index: {}]   ;;  %s395_s3 = inlined_call_operand.vmem [shape: f32[32,6], index: 3, kind: input, shape index: {}]   ;;  %s396_s0 = inlined_call_operand.vmem [shape: f32[2,90], index: 0, kind: input, shape index: {}]   ;;  %s397_s2 = inlined_call_operand.vmem [shape: f32[1,32], index: 2, kind: input, shape index: {}]   ;;  %s398_s4 = inlined_call_operand.vmem [shape: f32[1,6], index: 4, kind: input, shape index: {}]   ;;  %s399_s5 = inlined_call_operand.vmem [shape: f32[2,6], index: 5, kind: output, shape index: {}]  }
   0x1   :  { %271 = vmatprep.subr.bf16.mxu0 %v300_v0  ;;  %v21_v1 = vld [vmem:[%s394_s1] sm:$0xff]  ;;  %v22_v2 = vld [vmem:[%s394_s1 + $0x8] sm:$0xff]  ;;  %v23_v3 = vld [vmem:[%s394_s1 + $0x10] sm:$0xff]  ;;  %290 = vmatprep.subr.bf16.mxu1 %v300_v0  ;;  %vm303_vm2 = vmmov 1   ;;  %vm40_vm4 = vcmask 736256   ;;  %vm130_vm5 = vcmask 261120  }
   0x2   :  { %v272_v4 = vpack.c.bf16 %v22_v2, %v21_v1  ;;  %v24_v5 = vld [vmem:[%s394_s1 + $0x18] sm:$0xff]  ;;  %257 = vmatprep.mubr.msk.f32.mxu0 %vm301_vm0, %v302_v6  ;;  %268 = vmatprep.mubr.msk.f32.mxu1 %vm301_vm0, %v302_v6  ;;  %v25_v8 = vld [vmem:[%s394_s1 + $0x20] sm:$0xff]  ;;  %v26_v9 = vld [vmem:[%s394_s1 + $0x28] sm:$0xff]  ;;  %vm204_vm6 = vcmask 41984  }
   0x3   :  { %v275_v7 = vpack.c.bf16 %v24_v5, %v23_v3  ;;  %v119_v10 = vld [vmem:[%s395_s3] sm:$0xff]  ;;  %v120_v11 = vld [vmem:[%s395_s3 + $0x8] sm:$0xff]  ;;  %v278_v13 = vpack.c.bf16 %v26_v9, %v25_v8  ;;  %v27_v14 = vld [vmem:[%s394_s1 + $0x30] sm:$0xff] }
   0x4   :  { %273 = vmatpush3.bf16.msra.mxu0 %v272_v4  ;;  %v291_v12 = vpack.c.bf16 %v120_v11, %v119_v10  ;;  %v28_v15 = vld [vmem:[%s394_s1 + $0x38] sm:$0xff]  ;;  %v29_v17 = vld [vmem:[%s394_s1 + $0x40] sm:$0xff]  ;;  %v30_v18 = vld [vmem:[%s394_s1 + $0x48] sm:$0xff] }
   0x5   :  { %274 = vmatprep.subr.bf16.mxu0 %v300_v0  ;;  %v281_v16 = vpack.c.bf16 %v28_v15, %v27_v14  ;;  %v284_v19 = vpack.c.bf16 %v30_v18, %v29_v17  ;;  %v31_v20 = vld [vmem:[%s394_s1 + $0x50] sm:$0xff]  ;;  %v32_v21 = vld [vmem:[%s394_s1 + $0x58] sm:$0x3]  ;;  %vm288_vm3 = vmpackc.low %vm44_vm1, %vm303_vm2 }
   0x6   :  { %292 = vmatpush3.bf16.msra.mxu1 %v291_v12  ;;  %v287_v22 = vpack.c.bf16 %v32_v21, %v31_v20  ;;  %v20_v23 = vld [vmem:[%s396_s0] sm:$0x3]  ;;  %v121_v24 = vld [vmem:[%s395_s3 + $0x10] sm:$0xff]  ;;  %v122_v25 = vld [vmem:[%s395_s3 + $0x18] sm:$0xff] }
   0x7   :  { %293 = vmatprep.subr.bf16.mxu1 %v300_v0  ;;  %v294_v26 = vpack.c.bf16 %v122_v25, %v121_v24  ;;  %v210_v27 = vld [vmem:[%s397_s2] ss:$0 sm:$0xff] }
   0x8   :  { %276 = vmatpush3.bf16.msra.mxu0 %v275_v7  ;;  %v213_v32 = vld [vmem:[%s398_s4] ss:$0 sm:$0xff] }
   0x9   :  { %277 = vmatprep.subr.bf16.mxu0 %v300_v0 }
   0xa   :  { %295 = vmatpush3.bf16.msra.mxu1 %v294_v26 }
   0xc   :  { %279 = vmatpush3.bf16.msra.mxu0 %v278_v13 }
   0xd   :  { %280 = vmatprep.subr.bf16.mxu0 %v300_v0 }
  0x10   :  { %282 = vmatpush3.bf16.msra.mxu0 %v281_v16 }
  0x11   :  { %283 = vmatprep.subr.bf16.mxu0 %v300_v0 }
  0x14   :  { %285 = vmatpush3.bf16.msra.mxu0 %v284_v19 }
  0x15   :  { %286 = vmatprep.subr.bf16.mxu0 %v300_v0 }
  0x18   :  { %289 = vmatpush3.bf16.msk.msra.mxu0 %vm288_vm3, %v287_v22 }
  0x1b   :  { %258 = vmatmul.mubr.msk.f32.vlgmr.msra.gmra.mrb[0].mxu0 %vm40_vm4, %v20_v23 }
  0xee   :  { %v114_v28 = vpop.f32.mrb[0].mxu0 }
  0xef   :  { %v115_v29 = vadd.f32 %v210_v27, %v114_v28  ;;  %v259_v30 = vpop.f32.mrb[1].mxu0 }
  0xf1   :  { %v118_v31 = vmax.f32 %v115_v29, 0.0 }
  0xf3   :  { %269 = vmatmul.mubr.msk.f32.vlgmr.msra.gmra.mrb[0].mxu1 %vm130_vm5, %v118_v31 }
 0x1c6   :  { %v200_v33 = vpop.f32.mrb[0].mxu1 }
 0x1c7   :  { %v201_v34 = vadd.f32 %v213_v32, %v200_v33  ;;  %v270_v35 = vpop.f32.mrb[1].mxu1 }
 0x1c9   :  { %205 = vst.msk [vmem:[%s399_s5] sm:$0x3] %vm204_vm6, %v201_v34 }

// kernel: forward.9
= control target key start
LH: loop header
LB: loop body
LE: loop exit
PB: predicated region body
PF: predicated region fallthrough
CT: control target
= control target key end

     0   :  { %vm63_vm0 = vcmask 1043456   ;;  %vm64_vm1 = vcmask 1044480   ;;  %v744_v0 = vmov 0.0   ;;  %v745_v2 = vmov 65535   ;;  %s920_s0 = inlined_call_operand.vmem [shape: bf16[4,25,384], index: 0, kind: input, shape index: {}]   ;;  %s921_s1 = inlined_call_operand.vmem [shape: bf16[10,25], index: 1, kind: input, shape index: {}]   ;;  %s922_s2 = inlined_call_operand.vmem [shape: f32[10,1], index: 2, kind: input, shape index: {}]   ;;  %s923_s3 = inlined_call_operand.vmem [shape: f32[10,384], index: 3, kind: output, shape index: {}]  }
   0x1   :  { %674 = vmatprep.subr.bf16.mxu1 %v744_v0  ;;  %v711_v1 = vld [vmem:[%s920_s0 + $0x4] ss:$12 sps:$4 sm:$0xff]   ;;  %v65_v3 = vsel %vm63_vm0, 4294967295, %v745_v2  ;;  %v713_v4 = vld [vmem:[%s920_s0 + $0x8] ss:$12 sps:$4 sm:$0xff]   ;;  %vm746_vm2 = vmmov 0  }
   0x2   :  { %678 = vmatprep.mubr.msk.bf16.mxu1 %vm746_vm2, %v744_v0  ;;  %76 = vmatprep.subr.bf16.mxu0 %v711_v1  ;;  %v714_v5 = vld [vmem:[%s920_s0] ss:$12 sps:$4 sm:$0xff]   ;;  %v780_v6 = vsel %vm64_vm1, %v65_v3, 0  ;;  %v715_v7 = vld [vmem:[%s920_s0 + $0x1c] ss:$12 sps:$4 sm:$0x1f]  }
   0x3   :  { %675 = vmatpush3.bf16.msra.mxu1 %v713_v4  ;;  %77 = vmatpush1.bf16.msra.mxu0 %v714_v5  ;;  %v717_v8 = vld [vmem:[%s920_s0 + $0x20] ss:$12 sps:$4 sm:$0x1f]   ;;  %v71_v9 = vand.u32 %v715_v7, %v780_v6  ;;  %v718_v10 = vld [vmem:[%s920_s0 + $0x18] ss:$12 sps:$4 sm:$0x1f]  }
   0x4   :  { %676 = vmatprep.subr.bf16.mxu1 %v744_v0  ;;  %v747_v11 = vmov 0   ;;  %v74_v12 = vand.u32 %v717_v8, %v780_v6  ;;  %v799_v13 = vld [vmem:[%s921_s1] sm:$0x1f]   ;;  %v68_v14 = vand.u32 %v718_v10, %v780_v6  ;;  %v720_v15 = vld [vmem:[%s920_s0 + $0x30] ss:$12 sps:$4 sm:$0xff]   ;;  %vm59_vm3 = vcmask 203776  }
   0x5   :  { %108 = vmatprep.mubr.bf16.mxu0 %v747_v11  ;;  %710 = vset.pattern.permute.xlu0 %v747_v11  ;;  %v722_v16 = vld [vmem:[%s920_s0 + $0x34] ss:$12 sps:$4 sm:$0xff]   ;;  %v723_v17 = vld [vmem:[%s920_s0 + $0x38] ss:$12 sps:$4 sm:$0xff]   ;;  %v572_v38 = vld [vmem:[%s922_s2 + $0x8] sm:$0x3] }
   0x6   :  { %78 = vmatprep.subr.bf16.mxu0 %v71_v9  ;;  %v724_v18 = vld [vmem:[%s920_s0 + $0x48] ss:$12 sps:$4 sm:$0x1f]   ;;  %v726_v19 = vld [vmem:[%s920_s0 + $0x4c] ss:$12 sps:$4 sm:$0x1f]  }
   0x7   :  { %677 = vmatpush3.bf16.msra.mxu1 %v74_v12  ;;  %79 = vmatpush1.bf16.msra.mxu0 %v68_v14  ;;  %v727_v20 = vld [vmem:[%s920_s0 + $0x50] ss:$12 sps:$4 sm:$0x1f]   ;;  %v202_v21 = vand.u32 %v726_v19, %v780_v6  ;;  %v199_v23 = vand.u32 %v724_v18, %v780_v6  ;;  %v732_v26 = vld [vmem:[%s920_s0 + $0x78] ss:$12 sps:$4 sm:$0x1f]  }
   0x8   :  { %682 = vmatprep.subr.bf16.mxu1 %v744_v0  ;;  %207 = vmatprep.subr.bf16.mxu0 %v722_v16  ;;  %v205_v22 = vand.u32 %v727_v20, %v780_v6  ;;  %v730_v24 = vld [vmem:[%s920_s0 + $0x64] ss:$12 sps:$4 sm:$0xff]   ;;  %v734_v25 = vld [vmem:[%s920_s0 + $0x7c] ss:$12 sps:$4 sm:$0x1f]   ;;  %v330_v33 = vand.u32 %v732_v26, %v780_v6 }
   0x9   :  { %v731_v27 = vld [vmem:[%s920_s0 + $0x68] ss:$12 sps:$4 sm:$0xff]   ;;  %v735_v28 = vld [vmem:[%s920_s0 + $0x80] ss:$12 sps:$4 sm:$0x1f]   ;;  %v333_v30 = vand.u32 %v734_v25, %v780_v6 }
   0xa   :  { %679 = vmatmul.mubr.msk.bf16.vlgmr.msra.gmra.mrb[0].mxu1 %vm59_vm3, %v799_v13  ;;  %612 = vmatmul.mubr.msk.bf16.vlgmr.msra.gmra.mrb[0].mxu0 %vm59_vm3, %v799_v13  ;;  %v728_v29 = vld [vmem:[%s920_s0 + $0x60] ss:$12 sps:$4 sm:$0xff]   ;;  %v336_v31 = vand.u32 %v735_v28, %v780_v6  ;;  %v739_v36 = vld [vmem:[%s920_s0 + $0x98] ss:$12 sps:$4 sm:$0xff]   ;;  %v736_v39 = vld [vmem:[%s920_s0 + $0x90] ss:$12 sps:$4 sm:$0xff]  }
   0xb   :  { %683 = vmatpush3.bf16.msra.mxu1 %v723_v17  ;;  %208 = vmatpush1.bf16.msra.mxu0 %v720_v15  ;;  %v571_v32 = vld [vmem:[%s922_s2] sm:$0xff]  ;;  %v742_v35 = vld [vmem:[%s920_s0 + $0xac] ss:$12 sps:$4 sm:$0x1f]  }
   0xc   :  { %684 = vmatprep.subr.bf16.mxu1 %v744_v0  ;;  %209 = vmatprep.subr.bf16.mxu0 %v202_v21  ;;  %v738_v34 = vld [vmem:[%s920_s0 + $0x94] ss:$12 sps:$4 sm:$0xff]   ;;  %v743_v37 = vld [vmem:[%s920_s0 + $0xb0] ss:$12 sps:$4 sm:$0x1f]   ;;  %v464_v41 = vand.u32 %v742_v35, %v780_v6 }
   0xd   :  { %686 = vmatprep.mubr.msk.bf16.mxu1 %vm746_vm2, %v744_v0  ;;  %239 = vmatprep.mubr.bf16.mxu0 %v747_v11  ;;  %v740_v40 = vld [vmem:[%s920_s0 + $0xa8] ss:$12 sps:$4 sm:$0x1f]   ;;  %v467_v42 = vand.u32 %v743_v37, %v780_v6 }
   0xe   :  { %575 = vperm.xlu0 %710, %v571_v32   ;;  %v461_v43 = vand.u32 %v740_v40, %v780_v6 }
   0xf   :  { %685 = vmatpush3.bf16.msra.mxu1 %v205_v22  ;;  %210 = vmatpush1.bf16.msra.mxu0 %v199_v23 }
  0x10   :  { %690 = vmatprep.subr.bf16.mxu1 %v744_v0  ;;  %338 = vmatprep.subr.bf16.mxu0 %v730_v24 }
  0x12   :  { %687 = vmatmul.mubr.msk.bf16.vlgmr.msra.gmra.mrb[4].mxu1 %vm59_vm3, %v799_v13  ;;  %628 = vmatmul.mubr.msk.bf16.vlgmr.msra.gmra.mrb[4].mxu0 %vm59_vm3, %v799_v13 }
  0x13   :  { %691 = vmatpush3.bf16.msra.mxu1 %v731_v27  ;;  %339 = vmatpush1.bf16.msra.mxu0 %v728_v29 }
  0x14   :  { %692 = vmatprep.subr.bf16.mxu1 %v744_v0  ;;  %340 = vmatprep.subr.bf16.mxu0 %v333_v30 }
  0x15   :  { %694 = vmatprep.mubr.msk.bf16.mxu1 %vm746_vm2, %v744_v0  ;;  %370 = vmatprep.mubr.bf16.mxu0 %v747_v11 }
  0x16   :  { %580 = vperm.xlu0 %710, %v572_v38  }
  0x17   :  { %693 = vmatpush3.bf16.msra.mxu1 %v336_v31  ;;  %341 = vmatpush1.bf16.msra.mxu0 %v330_v33 }
  0x18   :  { %698 = vmatprep.subr.bf16.mxu1 %v744_v0  ;;  %469 = vmatprep.subr.bf16.mxu0 %v738_v34 }
  0x1a   :  { %695 = vmatmul.mubr.msk.bf16.vlgmr.msra.gmra.mrb[8].mxu1 %vm59_vm3, %v799_v13  ;;  %644 = vmatmul.mubr.msk.bf16.vlgmr.msra.gmra.mrb[8].mxu0 %vm59_vm3, %v799_v13 }
  0x1b   :  { %699 = vmatpush3.bf16.msra.mxu1 %v739_v36  ;;  %470 = vmatpush1.bf16.msra.mxu0 %v736_v39 }
  0x1c   :  { %700 = vmatprep.subr.bf16.mxu1 %v744_v0  ;;  %471 = vmatprep.subr.bf16.mxu0 %v464_v41 }
  0x1d   :  { %702 = vmatprep.mubr.msk.bf16.mxu1 %vm746_vm2, %v744_v0  ;;  %501 = vmatprep.mubr.bf16.mxu0 %v747_v11 }
  0x1f   :  { %701 = vmatpush3.bf16.msra.mxu1 %v467_v42  ;;  %472 = vmatpush1.bf16.msra.mxu0 %v461_v43 }
  0x22   :  { %703 = vmatmul.mubr.msk.bf16.vlgmr.msra.gmra.mrb[12].mxu1 %vm59_vm3, %v799_v13  ;;  %660 = vmatmul.mubr.msk.bf16.vlgmr.msra.gmra.mrb[12].mxu0 %vm59_vm3, %v799_v13 }
  0x8d   :  { %v576_v11 = vpop.permute.xlu0 %575 }
  0x95   :  { %v581_v32 = vpop.permute.xlu0 %580 }
  0xdd   :  { %v153_v44 = vpop.f32.mrb[0].mxu1  ;;  %v110_v45 = vpop.f32.mrb[0].mxu0 }
  0xde   :  { %v680_v46 = vpop.f32.mrb[1].mxu1  ;;  %v112_v47 = vpop.f32.mrb[1].mxu0 }
  0xdf   :  { %v156_v48 = vpop.f32.mrb[2].mxu1  ;;  %v114_v49 = vpop.f32.mrb[2].mxu0 }
  0xe0   :  { %v681_v50 = vpop.f32.mrb[3].mxu1  ;;  %v116_v51 = vpop.f32.mrb[3].mxu0 }
  0xe5   :  { %v284_v52 = vpop.f32.mrb[4].mxu1  ;;  %v241_v54 = vpop.f32.mrb[4].mxu0 }
  0xe6   :  { %v555_v53 = vmax.f32 %v153_v44, %v284_v52  ;;  %v688_v55 = vpop.f32.mrb[5].mxu1  ;;  %v553_v56 = vmax.f32 %v110_v45, %v241_v54  ;;  %v243_v57 = vpop.f32.mrb[5].mxu0 }
  0xe7   :  { %v287_v58 = vpop.f32.mrb[6].mxu1  ;;  %v554_v59 = vmax.f32 %v112_v47, %v243_v57  ;;  %v245_v61 = vpop.f32.mrb[6].mxu0 }
  0xe8   :  { %v558_v60 = vmax.f32 %v156_v48, %v287_v58  ;;  %v689_v62 = vpop.f32.mrb[7].mxu1  ;;  %v556_v63 = vmax.f32 %v114_v49, %v245_v61  ;;  %v247_v0 = vpop.f32.mrb[7].mxu0 }
  0xe9   :  { %v557_v1 = vmax.f32 %v116_v51, %v247_v0 }
  0xed   :  { %v415_v2 = vpop.f32.mrb[8].mxu1  ;;  %v372_v3 = vpop.f32.mrb[8].mxu0 }
  0xee   :  { %v696_v4 = vpop.f32.mrb[9].mxu1  ;;  %v374_v5 = vpop.f32.mrb[9].mxu0 }
  0xef   :  { %v418_v6 = vpop.f32.mrb[10].mxu1  ;;  %v376_v7 = vpop.f32.mrb[10].mxu0 }
  0xf0   :  { %v697_v8 = vpop.f32.mrb[11].mxu1  ;;  %v378_v9 = vpop.f32.mrb[11].mxu0 }
  0xf5   :  { %v546_v10 = vpop.f32.mrb[12].mxu1  ;;  %v503_v13 = vpop.f32.mrb[12].mxu0 }
  0xf6   :  { %v561_v12 = vmax.f32 %v415_v2, %v546_v10  ;;  %v704_v14 = vpop.f32.mrb[13].mxu1  ;;  %v559_v15 = vmax.f32 %v372_v3, %v503_v13  ;;  %v505_v16 = vpop.f32.mrb[13].mxu0 }
  0xf7   :  { %v549_v17 = vpop.f32.mrb[14].mxu1  ;;  %v560_v19 = vmax.f32 %v374_v5, %v505_v16  ;;  %v507_v21 = vpop.f32.mrb[14].mxu0 }
  0xf8   :  { %v567_v18 = vmax.f32 %v555_v53, %v561_v12  ;;  %v564_v20 = vmax.f32 %v418_v6, %v549_v17  ;;  %v705_v22 = vpop.f32.mrb[15].mxu1  ;;  %v565_v23 = vmax.f32 %v553_v56, %v559_v15  ;;  %v562_v24 = vmax.f32 %v376_v7, %v507_v21  ;;  %v509_v25 = vpop.f32.mrb[15].mxu0 }
  0xf9   :  { %v566_v27 = vmax.f32 %v554_v59, %v560_v19  ;;  %v563_v29 = vmax.f32 %v378_v9, %v509_v25 }
  0xfa   :  { %v585_v26 = vadd.f32 %v576_v11, %v567_v18  ;;  %v570_v28 = vmax.f32 %v558_v60, %v564_v20  ;;  %v583_v30 = vadd.f32 %v576_v11, %v565_v23  ;;  %v568_v31 = vmax.f32 %v556_v63, %v562_v24 }
  0xfb   :  { %v584_v34 = vadd.f32 %v576_v11, %v566_v27  ;;  %v569_v35 = vmax.f32 %v557_v1, %v563_v29 }
  0xfc   :  { %v591_v33 = vmax.f32 %v585_v26, 0.0  ;;  %v588_v36 = vadd.f32 %v581_v32, %v570_v28  ;;  %v589_v37 = vmax.f32 %v583_v30, 0.0  ;;  %v586_v38 = vadd.f32 %v581_v32, %v568_v31 }
  0xfd   :  { %v590_v39 = vmax.f32 %v584_v34, 0.0  ;;  %v587_v40 = vadd.f32 %v581_v32, %v569_v35 }
  0xfe   :  { %597 = vst [vmem:[%s923_s3 + $0x10] sm:$0xff] %v591_v33  ;;  %v594_v41 = vmax.f32 %v588_v36, 0.0  ;;  %595 = vst [vmem:[%s923_s3] sm:$0xff] %v589_v37  ;;  %v592_v42 = vmax.f32 %v586_v38, 0.0 }
  0xff   :  { %596 = vst [vmem:[%s923_s3 + $0x8] sm:$0xff] %v590_v39  ;;  %v593_v43 = vmax.f32 %v587_v40, 0.0 }
 0x100   :  { %600 = vst [vmem:[%s923_s3 + $0x28] sm:$0x3] %v594_v41  ;;  %598 = vst [vmem:[%s923_s3 + $0x18] sm:$0x3] %v592_v42 }
 0x101   :  { %599 = vst [vmem:[%s923_s3 + $0x20] sm:$0x3] %v593_v43 }

// kernel: forward.11
= control target key start
LH: loop header
LB: loop body
LE: loop exit
PB: predicated region body
PF: predicated region fallthrough
CT: control target
= control target key end

     0   :  { %v74_v3 = vlaneseq  ;;  %v532_v8 = vmov 0.0|0.0   ;;  %v533_v9 = vmov 1983009808   ;;  %vm534_vm0 = vmmov 0   ;;  %s744_s0 = inlined_call_operand.vmem [shape: f32[2,320], index: 0, kind: input, shape index: {}]   ;;  %s745_s1 = inlined_call_operand.vmem [shape: f32[320,50], index: 1, kind: input, shape index: {}]   ;;  %s746_s2 = inlined_call_operand.vmem [shape: f32[1,50], index: 2, kind: input, shape index: {}]   ;;  %s747_s3 = inlined_call_operand.vmem [shape: f32[50,10], index: 3, kind: input, shape index: {}]   ;;  %s748_s4 = inlined_call_operand.vmem [shape: f32[1,10], index: 4, kind: input, shape index: {}]   ;;  %s749_s5 = inlined_call_operand.hbm [shape: f32[2,10], index: 5, kind: output, shape index: {}]  }
   0x1   :  { %v38_v0 = vld [vmem:[%s745_s1 + $0x80] sm:$0xff]  ;;  %v39_v1 = vld [vmem:[%s745_s1 + $0x88] sm:$0xff]  ;;  %v40_v6 = vld [vmem:[%s745_s1 + $0x90] sm:$0xff]  ;;  %477 = vmatprep.subr.bf16.mxu1 %v532_v8  ;;  %v72_v10 = vunpack.c.l.s4 %v533_v9  ;;  %v535_v16 = vmov 0.0  }
   0x2   :  { %v22_v2 = vld [vmem:[%s745_s1] sm:$0xff]  ;;  %v445_v4 = vpack.c.bf16 %v39_v1, %v38_v0  ;;  %v23_v5 = vld [vmem:[%s745_s1 + $0x8] sm:$0xff]  ;;  %v41_v7 = vld [vmem:[%s745_s1 + $0x98] sm:$0xff]  ;;  %425 = vmatprep.mubr.msk.f32.mxu1 %vm534_vm0, %v535_v16  ;;  %v75_v23 = vshrl.u32 %v74_v3, 7 }
   0x3   :  { %v447_v11 = vpack.c.bf16 %v23_v5, %v22_v2  ;;  %v449_v12 = vpack.c.bf16 %v41_v7, %v40_v6  ;;  %v24_v13 = vld [vmem:[%s745_s1 + $0x10] sm:$0xff]  ;;  %v25_v14 = vld [vmem:[%s745_s1 + $0x18] sm:$0xff]  ;;  %v42_v15 = vld [vmem:[%s745_s1 + $0xa0] sm:$0xff]  ;;  %v73_v22 = vunpack.c.0.s8 %v72_v10 }
   0x4   :  { %446 = vmatprep.subr.bf16.mxu0 %v445_v4  ;;  %v43_v17 = vld [vmem:[%s745_s1 + $0xa8] sm:$0xff]  ;;  %v451_v18 = vpack.c.bf16 %v25_v14, %v24_v13  ;;  %v26_v20 = vld [vmem:[%s745_s1 + $0x20] sm:$0xff]  ;;  %v44_v24 = vld [vmem:[%s745_s1 + $0xb0] sm:$0xff] }
   0x5   :  { %448 = vmatpush3.bf16.msra.mxu0 %v447_v11  ;;  %v453_v19 = vpack.c.bf16 %v43_v17, %v42_v15  ;;  %v27_v21 = vld [vmem:[%s745_s1 + $0x28] sm:$0xff]  ;;  %v45_v25 = vld [vmem:[%s745_s1 + $0xb8] sm:$0xff]  ;;  %v54_v27 = vld [vmem:[%s745_s1 + $0x100] sm:$0xff]  ;;  %v76_v34 = vsub.s32 %v73_v22, %v75_v23 }
   0x6   :  { %450 = vmatprep.subr.bf16.mxu0 %v449_v12  ;;  %v455_v26 = vpack.c.bf16 %v27_v21, %v26_v20  ;;  %v55_v28 = vld [vmem:[%s745_s1 + $0x108] sm:$0xff]  ;;  %v457_v29 = vpack.c.bf16 %v45_v25, %v44_v24  ;;  %v28_v30 = vld [vmem:[%s745_s1 + $0x30] sm:$0xff]  ;;  %v29_v31 = vld [vmem:[%s745_s1 + $0x38] sm:$0xff] }
   0x7   :  { %v46_v32 = vld [vmem:[%s745_s1 + $0xc0] sm:$0xff]  ;;  %v478_v33 = vpack.c.bf16 %v55_v28, %v54_v27  ;;  %v47_v35 = vld [vmem:[%s745_s1 + $0xc8] sm:$0xff]  ;;  %v56_v36 = vld [vmem:[%s745_s1 + $0x110] sm:$0xff]  ;;  %v459_v39 = vpack.c.bf16 %v29_v31, %v28_v30 }
   0x8   :  { %v57_v37 = vld [vmem:[%s745_s1 + $0x118] sm:$0xff]  ;;  %v58_v40 = vld [vmem:[%s745_s1 + $0x120] sm:$0xff]  ;;  %v59_v41 = vld [vmem:[%s745_s1 + $0x128] sm:$0xff]  ;;  %v461_v43 = vpack.c.bf16 %v47_v35, %v46_v32 }
   0x9   :  { %452 = vmatpush3.bf16.msra.mxu0 %v451_v18  ;;  %479 = vmatpush3.bf16.msra.mxu1 %v478_v33  ;;  %v481_v38 = vpack.c.bf16 %v57_v37, %v56_v36  ;;  %v21_v42 = vld [vmem:[%s744_s0] sm:$0x3f]  ;;  %v31_v45 = vld [vmem:[%s745_s1 + $0x48] sm:$0xff]  ;;  %v48_v47 = vld [vmem:[%s745_s1 + $0xd0] sm:$0xff] }
   0xa   :  { %454 = vmatprep.subr.bf16.mxu0 %v453_v19  ;;  %480 = vmatprep.subr.bf16.mxu1 %v532_v8  ;;  %v30_v44 = vld [vmem:[%s745_s1 + $0x40] sm:$0xff]  ;;  %v77_v46 = vrot.slane %v21_v42, %v76_v34  ;;  %v49_v48 = vld [vmem:[%s745_s1 + $0xd8] sm:$0xff] }
   0xd   :  { %456 = vmatpush3.bf16.msra.mxu0 %v455_v26 }
   0xe   :  { %458 = vmatprep.subr.bf16.mxu0 %v457_v29 }
   0xf   :  { %10 = vsyncpa [#allocation3], 0  ;;  %482 = vmatpush3.bf16.msra.mxu1 %v481_v38  ;;  %v484_v49 = vpack.c.bf16 %v59_v41, %v58_v40  ;;  %v85_v50 = vcombine.high %v77_v46, %v77_v46  ;;  %v463_v51 = vpack.c.bf16 %v31_v45, %v30_v44  ;;  %v60_v52 = vld [vmem:[%s745_s1 + $0x130] sm:$0xff]  ;;  %v61_v53 = vld [vmem:[%s745_s1 + $0x138] sm:$0xff]  ;;  %v465_v54 = vpack.c.bf16 %v49_v48, %v48_v47 }
  0x10   :  { %483 = vmatprep.subr.bf16.mxu1 %v532_v8  ;;  %v32_v55 = vld [vmem:[%s745_s1 + $0x50] sm:$0xff]  ;;  %v33_v56 = vld [vmem:[%s745_s1 + $0x58] sm:$0xff]  ;;  %v50_v57 = vld [vmem:[%s745_s1 + $0xe0] sm:$0xff]  ;;  %v70_v59 = vcombine.high %v21_v42, %v21_v42  ;;  %v487_v60 = vpack.c.bf16 %v61_v53, %v60_v52  ;;  %vm88_vm1 = vcmask 523264   ;;  %vm250_vm2 = vcmask 1041408  }
  0x11   :  { %460 = vmatpush3.bf16.msra.mxu0 %v459_v39  ;;  %155 = vmatprep.mubr.f32.mxu0 %v85_v50  ;;  %v51_v58 = vld [vmem:[%s745_s1 + $0xe8] sm:$0xff]  ;;  %v467_v61 = vpack.c.bf16 %v33_v56, %v32_v55  ;;  %v232_v62 = vld [vmem:[%s747_s3] sm:$0xff]  ;;  %v52_v3 = vld [vmem:[%s745_s1 + $0xf0] sm:$0xff]  ;;  %vm246_vm3 = vcmask 408576   ;;  %vm324_vm4 = vcmask 74752  }
  0x12   :  { %462 = vmatprep.subr.bf16.mxu0 %v461_v43  ;;  %v233_v63 = vld [vmem:[%s747_s3 + $0x8] sm:$0xff]  ;;  %v469_v0 = vpack.c.bf16 %v51_v58, %v50_v57  ;;  %v34_v1 = vld [vmem:[%s745_s1 + $0x60] sm:$0xff]  ;;  %v53_v4 = vld [vmem:[%s745_s1 + $0xf8] sm:$0xff]  ;;  %v84_v5 = vrot.slane %v70_v59, %v76_v34 }
  0x13   :  { %485 = vmatpush3.bf16.msra.mxu1 %v484_v49  ;;  %v35_v2 = vld [vmem:[%s745_s1 + $0x68] sm:$0xff]  ;;  %v490_v6 = vpack.c.bf16 %v233_v63, %v232_v62  ;;  %v473_v9 = vpack.c.bf16 %v53_v4, %v52_v3  ;;  %v36_v10 = vld [vmem:[%s745_s1 + $0x70] sm:$0xff]  ;;  %v37_v11 = vld [vmem:[%s745_s1 + $0x78] sm:$0xff] }
  0x14   :  { %486 = vmatprep.subr.bf16.mxu1 %v532_v8  ;;  %v471_v7 = vpack.c.bf16 %v35_v2, %v34_v1  ;;  %v475_v12 = vpack.c.bf16 %v37_v11, %v36_v10  ;;  %v234_v13 = vld [vmem:[%s747_s3 + $0x10] sm:$0xff]  ;;  %v235_v14 = vld [vmem:[%s747_s3 + $0x18] sm:$0xff]  ;;  %v236_v17 = vld [vmem:[%s747_s3 + $0x20] sm:$0xff] }
  0x15   :  { %464 = vmatpush3.bf16.msra.mxu0 %v463_v51  ;;  %v493_v15 = vpack.c.bf16 %v235_v14, %v234_v13  ;;  %v237_v18 = vld [vmem:[%s747_s3 + $0x28] sm:$0xff]  ;;  %v238_v20 = vld [vmem:[%s747_s3 + $0x30] sm:$0x3]  ;;  %v352_v24 = vld [vmem:[%s746_s2] ss:$0 sm:$0xff]  ;;  %s536_s2 = smov [#allocation2]  }
  0x16   :  { %466 = vmatprep.subr.bf16.mxu0 %v465_v54  ;;  %v496_v19 = vpack.c.bf16 %v237_v18, %v236_v17  ;;  %s344_s3 = sshll.u32 %s536_s2, 4  ;;  %s345_s3 = int_to_ptr.vmem [resolvable:$true] %s344_s3 }
  0x17   :  { %488 = vmatpush3.bf16.msra.mxu1 %v487_v60  ;;  %p513_p1 = scmp.lt.s32.totalorder %s345_s3, %s345_s3 }
  0x18   :  { %489 = vmatprep.subr.bf16.mxu1 %v532_v8 }
  0x19   :  { %468 = vmatpush3.bf16.msra.mxu0 %v467_v61 }
  0x1a   :  { %470 = vmatprep.subr.bf16.mxu0 %v469_v0  ;;  %426 = vmatmul.mubr.msk.f32.vlgmr.msra.gmra.mrb[0].mxu1 %vm88_vm1, %v84_v5 }
  0x1b   :  { %491 = vmatpush3.bf16.msra.mxu1 %v490_v6  ;;  %442 = vmatprep.mubr.msk.f32.mxu1 %vm534_vm0, %v535_v16 }
  0x1c   :  { %492 = vmatprep.subr.bf16.mxu1 %v532_v8 }
  0x1d   :  { %472 = vmatpush3.bf16.msra.mxu0 %v471_v7 }
  0x1e   :  { %474 = vmatprep.subr.bf16.mxu0 %v473_v9 }
  0x1f   :  { %494 = vmatpush3.bf16.msra.mxu1 %v493_v15 }
  0x20   :  { %495 = vmatprep.subr.bf16.mxu1 %v532_v8 }
  0x21   :  { %476 = vmatpush3.bf16.msra.mxu0 %v475_v12 }
  0x23   :  { %497 = vmatpush3.bf16.msra.mxu1 %v496_v19 }
  0x24   :  { %156 = vmatmul.mubr.f32.vlgmr.msra.gmra.mrb[0].mxu0 %v77_v46  ;;  %440 = vmatprep.subr.mxu1 %v535_v16  ;;  %v354_v16 = vld [vmem:[%s748_s4] ss:$0 sm:$0xff]  ;;  %s508_s4 = scalar_lea.vmem %s345_s3, 32 }
  0x25   :  { %p509_p0 = scmp.ne.s32.totalorder %s345_s3, %s508_s4  ;;  %p514_p2 = scmp.lt.s32.totalorder %s508_s4, %s508_s4 }
  0x27   :  { %441 = vmatpush3.msk.msra.mxu1 %vm250_vm2, %v238_v20  ;;  %p515_p3 = por %p514_p2, %p513_p1 }
  0x29   :  { %p516_p4 = pnand %p515_p3, %p509_p0 }
  0xed   :  { %v227_v21 = vpop.f32.mrb[0].mxu1 }
  0xee   :  { %v427_v8 = vpop.f32.mrb[1].mxu1 }
  0xf7   :  { %v389_v22 = vpop.f32.mrb[0].mxu0 }
  0xf8   :  { %v390_v23 = vpop.f32.mrb[1].mxu0 }
  0xf9   :  { %v391_v25 = vadd.f32 %v390_v23, %v389_v22 }
  0xfb   :  { %v158_v26 = vadd.f32 %v391_v25, %v352_v24 }
  0xfd   :  { %v228_v27 = vadd.f32 %v227_v21, %v158_v26 }
  0xff   :  { %v231_v28 = vmax.f32 %v228_v27, 0.0 }
 0x101   :  { %443 = vmatmul.mubr.msk.f32.vlgmr.msra.gmra.mrb[2].mxu1 %vm246_vm3, %v231_v28 }
 0x1d4   :  { %v320_v29 = vpop.f32.mrb[2].mxu1 }
 0x1d5   :  { %v321_v30 = vadd.f32 %v354_v16, %v320_v29  ;;  %v444_v31 = vpop.f32.mrb[3].mxu1 }
 0x1d7   :  { %v325_v32 = vsel %vm324_vm4, %v321_v30, -inf }
 0x1d8   :  { %326 = vmax.xlane.f32.xlu0 %v325_v32 }
 0x265   :  { %v327_v33 = vpop.xlane.xlu0 %326 }
 0x266   :  { %v328_v34 = vsub.f32 %v321_v30, %v327_v33 }
 0x268   :  { %v329_v35 = vmul.f32 1.442695, %v328_v34 }
 0x26a   :  { %504 = vpow2.f32 %v329_v35 }
 0x274   :  { %v505_v36 = vpop.eup %504 }
 0x275   :  { %v331_v37 = vsel %vm324_vm4, %v505_v36, 0.0 }
 0x276   :  { %332 = vadd.xlane.f32.xlu0 %v331_v37 }
 0x303   :  { %v333_v38 = vpop.xlane.xlu0 %332 }
 0x304   :  { %506 = vlog2.f32 %v333_v38 }
 0x30e   :  { %v507_v39 = vpop.eup %506 }
 0x30f   :  { %v335_v40 = vmul.f32 0.6931472, %v507_v39 }
 0x311   :  { %v336_v41 = vsub.f32 %v328_v34, %v335_v40 }
 0x313   :  { %337 = vst.msk [vmem:[#allocation2] sm:$0x3] %vm324_vm4, %v336_v41 }
 0x314   :  { %519 = shalt.err (!%p516_p4)
}
 0x315   :  { %s520_s17 = scalar_lea.hbm %s749_s5, 32 }
 0x316   :  { %p521_p5 = scmp.ne.s32.totalorder %s749_s5, %s520_s17  ;;  %p524_p6 = scmp.lt.u32.totalorder %s520_s17, %s749_s5 }
 0x318   :  { %p526_p7 = pnand %p524_p6, %p521_p5 }
 0x31a   :  { %529 = shalt.err (!%p526_p7)
}
 0x31b   :  { %347 = dma.vmem_to_hbm [thread:$0]  %s345_s3, 32, %s749_s5, [#allocation3]  }
 0x31c   :  { %530 = dma.done.wait [#allocation3], 32  }
 0x31d   :  { %531 = vsyncadd [#allocation3], 4294967264 }
 0x31e   :  { %351 = vsyncpa [#allocation3], 1 }

// kernel: forward.10
= control target key start
LH: loop header
LB: loop body
LE: loop exit
PB: predicated region body
PF: predicated region fallthrough
CT: control target
= control target key end

     0   :  { %v1156_v1 = vmov 0   ;;  %vm167_vm0 = vcmask 1044480   ;;  %vm160_vm1 = vcmask 998400   ;;  %s1420_s0 = inlined_call_operand.vmem [shape: bf16[4,250,128], index: 0, kind: input, shape index: {}]   ;;  %s1421_s1 = inlined_call_operand.vmem [shape: bf16[20,250], index: 1, kind: input, shape index: {}]   ;;  %s1422_s2 = inlined_call_operand.vmem [shape: f32[20,1], index: 2, kind: input, shape index: {}]   ;;  %s1423_s3 = inlined_call_operand.vmem [shape: f32[20,128], index: 3, kind: output, shape index: {}]  }
   0x1   :  { %v1087_v0 = vld [vmem:[%s1420_s0 + $0x40] sm:$0xff]   ;;  %1085 = vset.pattern.permute.xlu0 %v1156_v1  ;;  %1086 = vset.pattern.permute.xlu1 %v1156_v1  ;;  %v1091_v5 = vld [vmem:[%s1420_s0 + $0x48] sm:$0xff]   ;;  %v1095_v9 = vld [vmem:[%s1420_s0 + $0x50] sm:$0xff]  }
   0x2   :  { %v1088_v2 = vld [vmem:[%s1420_s0 + $0xc0] sm:$0xff]   ;;  %968 = vmatprep.subr.bf16.mxu0 %v1087_v0  ;;  %v1092_v6 = vld [vmem:[%s1420_s0 + $0xc8] sm:$0xff]   ;;  %v1096_v10 = vld [vmem:[%s1420_s0 + $0xd0] sm:$0xff]  }
   0x3   :  { %v1089_v3 = vld [vmem:[%s1420_s0] sm:$0xff]   ;;  %996 = vmatprep.subr.bf16.mxu1 %v1088_v2  ;;  %v1093_v7 = vld [vmem:[%s1420_s0 + $0x8] sm:$0xff]   ;;  %v1097_v11 = vld [vmem:[%s1420_s0 + $0x10] sm:$0xff]  }
   0x4   :  { %v1090_v4 = vld [vmem:[%s1420_s0 + $0x80] sm:$0xff]   ;;  %969 = vmatpush3.bf16.msra.mxu0 %v1089_v3  ;;  %v1094_v8 = vld [vmem:[%s1420_s0 + $0x88] sm:$0xff]   ;;  %v1098_v12 = vld [vmem:[%s1420_s0 + $0x90] sm:$0xff]  }
   0x5   :  { %997 = vmatpush3.bf16.msra.mxu1 %v1090_v4  ;;  %970 = vmatprep.subr.bf16.mxu0 %v1091_v5  ;;  %v1099_v13 = vld [vmem:[%s1420_s0 + $0x58] sm:$0xff]   ;;  %v1103_v17 = vld [vmem:[%s1420_s0 + $0x60] sm:$0xff]   ;;  %v1107_v21 = vld [vmem:[%s1420_s0 + $0x68] sm:$0xff]  }
   0x6   :  { %998 = vmatprep.subr.bf16.mxu1 %v1092_v6  ;;  %v1100_v14 = vld [vmem:[%s1420_s0 + $0xd8] sm:$0xff]   ;;  %v1104_v18 = vld [vmem:[%s1420_s0 + $0xe0] sm:$0xff]   ;;  %v1108_v22 = vld [vmem:[%s1420_s0 + $0xe8] sm:$0xff]  }
   0x7   :  { %v1101_v15 = vld [vmem:[%s1420_s0 + $0x18] sm:$0xff]   ;;  %v1105_v19 = vld [vmem:[%s1420_s0 + $0x20] sm:$0xff]   ;;  %v1109_v23 = vld [vmem:[%s1420_s0 + $0x28] sm:$0xff]  }
   0x8   :  { %971 = vmatpush3.bf16.msra.mxu0 %v1093_v7  ;;  %v1102_v16 = vld [vmem:[%s1420_s0 + $0x98] sm:$0xff]   ;;  %v1106_v20 = vld [vmem:[%s1420_s0 + $0xa0] sm:$0xff]   ;;  %v1110_v24 = vld [vmem:[%s1420_s0 + $0xa8] sm:$0xff]  }
   0x9   :  { %999 = vmatpush3.bf16.msra.mxu1 %v1094_v8  ;;  %972 = vmatprep.subr.bf16.mxu0 %v1095_v9  ;;  %v1111_v25 = vld [vmem:[%s1420_s0 + $0x70] sm:$0xff]   ;;  %v1115_v29 = vld [vmem:[%s1420_s0 + $0x78] sm:$0x1f]   ;;  %v1278_v33 = vld [vmem:[%s1421_s1 + $0x4] ss:$8 sps:$4 sm:$0xff]  }
   0xa   :  { %1000 = vmatprep.subr.bf16.mxu1 %v1096_v10  ;;  %v1112_v26 = vld [vmem:[%s1420_s0 + $0xf0] sm:$0xff]   ;;  %v1116_v30 = vld [vmem:[%s1420_s0 + $0xf8] sm:$0x1f]   ;;  %v1283_v34 = vld [vmem:[%s1421_s1] ss:$8 sps:$4 sm:$0xff]   ;;  %816 = vmatprep.mubr.msk.bf16.mxu0 %vm160_vm1, %v1278_v33 }
   0xb   :  { %v1113_v27 = vld [vmem:[%s1420_s0 + $0x30] sm:$0xff]   ;;  %v1117_v31 = vld [vmem:[%s1420_s0 + $0x38] sm:$0xff]   ;;  %866 = vmatprep.mubr.msk.bf16.mxu1 %vm160_vm1, %v1278_v33  ;;  %v1122_v35 = vld [vmem:[%s1420_s0 + $0x140] sm:$0xff]  }
   0xc   :  { %973 = vmatpush3.bf16.msra.mxu0 %v1097_v11  ;;  %v1114_v28 = vld [vmem:[%s1420_s0 + $0xb0] sm:$0xff]   ;;  %v1118_v32 = vld [vmem:[%s1420_s0 + $0xb8] sm:$0xff]   ;;  %v1123_v36 = vld [vmem:[%s1420_s0 + $0x1c0] sm:$0xff]  }
   0xd   :  { %1001 = vmatpush3.bf16.msra.mxu1 %v1098_v12  ;;  %974 = vmatprep.subr.bf16.mxu0 %v1099_v13  ;;  %v1124_v37 = vld [vmem:[%s1420_s0 + $0x100] sm:$0xff]   ;;  %v1126_v39 = vld [vmem:[%s1420_s0 + $0x148] sm:$0xff]   ;;  %v1130_v43 = vld [vmem:[%s1420_s0 + $0x150] sm:$0xff]  }
   0xe   :  { %1002 = vmatprep.subr.bf16.mxu1 %v1100_v14  ;;  %v1125_v38 = vld [vmem:[%s1420_s0 + $0x180] sm:$0xff]   ;;  %v1127_v40 = vld [vmem:[%s1420_s0 + $0x1c8] sm:$0xff]   ;;  %v1131_v44 = vld [vmem:[%s1420_s0 + $0x1d0] sm:$0xff]  }
   0xf   :  { %v1128_v41 = vld [vmem:[%s1420_s0 + $0x108] sm:$0xff]   ;;  %v1132_v45 = vld [vmem:[%s1420_s0 + $0x110] sm:$0xff]   ;;  %v1134_v47 = vld [vmem:[%s1420_s0 + $0x158] sm:$0xff]  }
  0x10   :  { %975 = vmatpush3.bf16.msra.mxu0 %v1101_v15  ;;  %v1129_v42 = vld [vmem:[%s1420_s0 + $0x188] sm:$0xff]   ;;  %v1133_v46 = vld [vmem:[%s1420_s0 + $0x190] sm:$0xff]   ;;  %v1135_v48 = vld [vmem:[%s1420_s0 + $0x1d8] sm:$0xff]  }
  0x11   :  { %1003 = vmatpush3.bf16.msra.mxu1 %v1102_v16  ;;  %976 = vmatprep.subr.bf16.mxu0 %v1103_v17  ;;  %v1136_v49 = vld [vmem:[%s1420_s0 + $0x118] sm:$0xff]   ;;  %v1138_v51 = vld [vmem:[%s1420_s0 + $0x160] sm:$0xff]   ;;  %v17_v55 = vld [vmem:[%s1421_s1 + $0x10] sm:$0x33] }
  0x12   :  { %1004 = vmatprep.subr.bf16.mxu1 %v1104_v18  ;;  %v1137_v50 = vld [vmem:[%s1420_s0 + $0x198] sm:$0xff]   ;;  %v1139_v52 = vld [vmem:[%s1420_s0 + $0x1e0] sm:$0xff]   ;;  %v799_v56 = vcombine.high %v17_v55, %v17_v55  ;;  %v1143_v57 = vld [vmem:[%s1420_s0 + $0x168] sm:$0xff]   ;;  %v798_v58 = vcombine.low %v17_v55, %v17_v55 }
  0x13   :  { %v1140_v53 = vld [vmem:[%s1420_s0 + $0x120] sm:$0xff]   ;;  %v1144_v59 = vld [vmem:[%s1420_s0 + $0x1e8] sm:$0xff]   ;;  %v1148_v62 = vld [vmem:[%s1420_s0 + $0x170] sm:$0xff]  }
  0x14   :  { %977 = vmatpush3.bf16.msra.mxu0 %v1105_v19  ;;  %v1141_v54 = vld [vmem:[%s1420_s0 + $0x1a0] sm:$0xff]   ;;  %v1146_v60 = vld [vmem:[%s1420_s0 + $0x128] sm:$0xff]   ;;  %v1149_v63 = vld [vmem:[%s1420_s0 + $0x1f0] sm:$0xff]  }
  0x15   :  { %1005 = vmatpush3.bf16.msra.mxu1 %v1106_v20  ;;  %978 = vmatprep.subr.bf16.mxu0 %v1107_v21  ;;  %v1147_v61 = vld [vmem:[%s1420_s0 + $0x1a8] sm:$0xff]   ;;  %v1150_v0 = vld [vmem:[%s1420_s0 + $0x130] sm:$0xff]   ;;  %v1152_v2 = vld [vmem:[%s1420_s0 + $0x178] sm:$0x1f]  }
  0x16   :  { %1006 = vmatprep.subr.bf16.mxu1 %v1108_v22  ;;  %v1151_v1 = vld [vmem:[%s1420_s0 + $0x1b0] sm:$0xff]   ;;  %v1153_v3 = vld [vmem:[%s1420_s0 + $0x1f8] sm:$0x1f]   ;;  %v765_v6 = vld [vmem:[%s1422_s2] sm:$0xff] }
  0x17   :  { %v1154_v4 = vld [vmem:[%s1420_s0 + $0x138] sm:$0xff]   ;;  %770 = vperm.xlu0 %1085, %v765_v6   ;;  %v767_v7 = vld [vmem:[%s1422_s2 + $0x10] sm:$0xf]  ;;  %v766_v8 = vld [vmem:[%s1422_s2 + $0x8] sm:$0xff] }
  0x18   :  { %979 = vmatpush3.bf16.msra.mxu0 %v1109_v23  ;;  %v1155_v5 = vld [vmem:[%s1420_s0 + $0x1b8] sm:$0xff]   ;;  %780 = vperm.xlu1 %1086, %v767_v7  }
  0x19   :  { %1007 = vmatpush3.bf16.msra.mxu1 %v1110_v24  ;;  %980 = vmatprep.subr.bf16.mxu0 %v1111_v25 }
  0x1a   :  { %1008 = vmatprep.subr.bf16.mxu1 %v1112_v26 }
  0x1b   :  { %775 = vperm.xlu0 %1085, %v766_v8  }
  0x1c   :  { %981 = vmatpush3.bf16.msra.mxu0 %v1113_v27 }
  0x1d   :  { %1009 = vmatpush3.bf16.msra.mxu1 %v1114_v28  ;;  %1080 = vmatprep.subr.msk.bf16.mxu0 %vm167_vm0, %v1115_v29 }
  0x1e   :  { %1081 = vmatprep.subr.msk.bf16.mxu1 %vm167_vm0, %v1116_v30 }
  0x20   :  { %983 = vmatpush3.bf16.msra.mxu0 %v1117_v31 }
  0x21   :  { %1011 = vmatpush3.bf16.msra.mxu1 %v1118_v32  ;;  %1024 = vmatprep.subr.bf16.mxu0 %v1122_v35 }
  0x22   :  { %1052 = vmatprep.subr.bf16.mxu1 %v1123_v36 }
  0x23   :  { %204 = vmatmul.mubr.bf16.vlgmr.msra.gmra.mrb[0].mxu0 %v1283_v34 }
  0x24   :  { %383 = vmatmul.mubr.bf16.vlgmr.msra.gmra.mrb[0].mxu1 %v1283_v34  ;;  %1025 = vmatpush3.bf16.msra.mxu0 %v1124_v37 }
  0x25   :  { %1053 = vmatpush3.bf16.msra.mxu1 %v1125_v38  ;;  %1026 = vmatprep.subr.bf16.mxu0 %v1126_v39 }
  0x26   :  { %1054 = vmatprep.subr.bf16.mxu1 %v1127_v40  ;;  %817 = vmatprep.mubr.msk.bf16.mxu0 %vm160_vm1, %v799_v56 }
  0x27   :  { %867 = vmatprep.mubr.msk.bf16.mxu1 %vm160_vm1, %v799_v56 }
  0x28   :  { %1027 = vmatpush3.bf16.msra.mxu0 %v1128_v41 }
  0x29   :  { %1055 = vmatpush3.bf16.msra.mxu1 %v1129_v42  ;;  %1028 = vmatprep.subr.bf16.mxu0 %v1130_v43 }
  0x2a   :  { %1056 = vmatprep.subr.bf16.mxu1 %v1131_v44 }
  0x2b   :  { %212 = vmatmul.mubr.bf16.gmra.mrb[4].mxu0 %v798_v58 }
  0x2c   :  { %1029 = vmatpush3.bf16.msra.mxu0 %v1132_v45  ;;  %391 = vmatmul.mubr.bf16.gmra.mrb[4].mxu1 %v798_v58 }
  0x2d   :  { %1057 = vmatpush3.bf16.msra.mxu1 %v1133_v46  ;;  %1030 = vmatprep.subr.bf16.mxu0 %v1134_v47 }
  0x2e   :  { %1058 = vmatprep.subr.bf16.mxu1 %v1135_v48  ;;  %916 = vmatprep.mubr.msk.bf16.mxu0 %vm160_vm1, %v1278_v33 }
  0x2f   :  { %966 = vmatprep.mubr.msk.bf16.mxu1 %vm160_vm1, %v1278_v33 }
  0x30   :  { %1031 = vmatpush3.bf16.msra.mxu0 %v1136_v49 }
  0x31   :  { %1059 = vmatpush3.bf16.msra.mxu1 %v1137_v50  ;;  %1032 = vmatprep.subr.bf16.mxu0 %v1138_v51 }
  0x32   :  { %1060 = vmatprep.subr.bf16.mxu1 %v1139_v52 }
  0x34   :  { %1033 = vmatpush3.bf16.msra.mxu0 %v1140_v53 }
  0x35   :  { %1061 = vmatpush3.bf16.msra.mxu1 %v1141_v54  ;;  %1034 = vmatprep.subr.bf16.mxu0 %v1143_v57 }
  0x36   :  { %1062 = vmatprep.subr.bf16.mxu1 %v1144_v59 }
  0x38   :  { %1035 = vmatpush3.bf16.msra.mxu0 %v1146_v60 }
  0x39   :  { %1063 = vmatpush3.bf16.msra.mxu1 %v1147_v61  ;;  %1036 = vmatprep.subr.bf16.mxu0 %v1148_v62 }
  0x3a   :  { %1064 = vmatprep.subr.bf16.mxu1 %v1149_v63 }
  0x3c   :  { %1037 = vmatpush3.bf16.msra.mxu0 %v1150_v0 }
  0x3d   :  { %1065 = vmatpush3.bf16.msra.mxu1 %v1151_v1  ;;  %1082 = vmatprep.subr.msk.bf16.mxu0 %vm167_vm0, %v1152_v2 }
  0x3e   :  { %1083 = vmatprep.subr.msk.bf16.mxu1 %vm167_vm0, %v1153_v3 }
  0x40   :  { %1039 = vmatpush3.bf16.msra.mxu0 %v1154_v4 }
  0x41   :  { %1067 = vmatpush3.bf16.msra.mxu1 %v1155_v5 }
  0x43   :  { %562 = vmatmul.mubr.bf16.vlgmr.msra.gmra.mrb[8].mxu0 %v1283_v34 }
  0x44   :  { %741 = vmatmul.mubr.bf16.vlgmr.msra.gmra.mrb[8].mxu1 %v1283_v34  ;;  %917 = vmatprep.mubr.msk.bf16.mxu0 %vm160_vm1, %v799_v56 }
  0x45   :  { %967 = vmatprep.mubr.msk.bf16.mxu1 %vm160_vm1, %v799_v56 }
  0x4b   :  { %570 = vmatmul.mubr.bf16.gmra.mrb[12].mxu0 %v798_v58 }
  0x4c   :  { %749 = vmatmul.mubr.bf16.gmra.mrb[12].mxu1 %v798_v58 }
  0x96   :  { %v771_v34 = vpop.permute.xlu0 %770 }
  0x97   :  { %v781_v3 = vpop.permute.xlu1 %780 }
  0x9a   :  { %v776_v50 = vpop.permute.xlu0 %775 }
  0xf6   :  { %v984_v9 = vpop.f32.mrb[0].mxu0 }
  0xf7   :  { %v1012_v10 = vpop.f32.mrb[0].mxu1  ;;  %v985_v11 = vpop.f32.mrb[1].mxu0 }
  0xf8   :  { %v986_v12 = vadd.f32 %v985_v11, %v984_v9  ;;  %v1013_v13 = vpop.f32.mrb[1].mxu1  ;;  %v987_v14 = vpop.f32.mrb[2].mxu0 }
  0xf9   :  { %v1014_v15 = vadd.f32 %v1013_v13, %v1012_v10  ;;  %v1015_v16 = vpop.f32.mrb[2].mxu1  ;;  %v988_v17 = vpop.f32.mrb[3].mxu0 }
  0xfa   :  { %v989_v18 = vadd.f32 %v988_v17, %v987_v14  ;;  %v1016_v19 = vpop.f32.mrb[3].mxu1 }
  0xfb   :  { %v756_v20 = vmax.f32 %v986_v12, %v1014_v15  ;;  %v1017_v21 = vadd.f32 %v1016_v19, %v1015_v16 }
  0xfd   :  { %v757_v22 = vmax.f32 %v989_v18, %v1017_v21 }
  0xfe   :  { %v990_v23 = vpop.f32.mrb[4].mxu0 }
  0xff   :  { %v1018_v24 = vpop.f32.mrb[4].mxu1  ;;  %v991_v25 = vpop.f32.mrb[5].mxu0 }
 0x100   :  { %v1019_v26 = vpop.f32.mrb[5].mxu1  ;;  %v992_v27 = vadd.f32 %v991_v25, %v990_v23  ;;  %v993_v29 = vpop.f32.mrb[6].mxu0 }
 0x101   :  { %v1020_v28 = vadd.f32 %v1019_v26, %v1018_v24  ;;  %v1021_v30 = vpop.f32.mrb[6].mxu1  ;;  %v994_v31 = vpop.f32.mrb[7].mxu0 }
 0x102   :  { %v1022_v32 = vpop.f32.mrb[7].mxu1 }
 0x103   :  { %v758_v33 = vmax.f32 %v992_v27, %v1020_v28 }
 0x116   :  { %v1040_v35 = vpop.f32.mrb[8].mxu0 }
 0x117   :  { %v1068_v36 = vpop.f32.mrb[8].mxu1  ;;  %v1041_v37 = vpop.f32.mrb[9].mxu0 }
 0x118   :  { %v1069_v38 = vpop.f32.mrb[9].mxu1  ;;  %v1042_v39 = vadd.f32 %v1041_v37, %v1040_v35  ;;  %v1043_v41 = vpop.f32.mrb[10].mxu0 }
 0x119   :  { %v1070_v40 = vadd.f32 %v1069_v38, %v1068_v36  ;;  %v1071_v42 = vpop.f32.mrb[10].mxu1  ;;  %v1044_v43 = vpop.f32.mrb[11].mxu0 }
 0x11a   :  { %v1072_v44 = vpop.f32.mrb[11].mxu1  ;;  %v1045_v46 = vadd.f32 %v1044_v43, %v1043_v41 }
 0x11b   :  { %v759_v45 = vmax.f32 %v1042_v39, %v1070_v40  ;;  %v1073_v47 = vadd.f32 %v1072_v44, %v1071_v42 }
 0x11d   :  { %v760_v48 = vmax.f32 %v1045_v46, %v1073_v47  ;;  %v762_v49 = vmax.f32 %v756_v20, %v759_v45 }
 0x11e   :  { %v1046_v52 = vpop.f32.mrb[12].mxu0 }
 0x11f   :  { %v783_v51 = vadd.f32 %v771_v34, %v762_v49  ;;  %v1074_v53 = vpop.f32.mrb[12].mxu1  ;;  %v763_v54 = vmax.f32 %v757_v22, %v760_v48  ;;  %v1047_v55 = vpop.f32.mrb[13].mxu0 }
 0x120   :  { %v1075_v56 = vpop.f32.mrb[13].mxu1  ;;  %v1048_v59 = vadd.f32 %v1047_v55, %v1046_v52  ;;  %v1049_v61 = vpop.f32.mrb[14].mxu0 }
 0x121   :  { %v786_v57 = vmax.f32 %v783_v51, 0.0  ;;  %v784_v58 = vadd.f32 %v776_v50, %v763_v54  ;;  %v1076_v60 = vadd.f32 %v1075_v56, %v1074_v53  ;;  %v1077_v62 = vpop.f32.mrb[14].mxu1  ;;  %v1050_v63 = vpop.f32.mrb[15].mxu0 }
 0x122   :  { %v1078_v0 = vpop.f32.mrb[15].mxu1 }
 0x123   :  { %789 = vst [vmem:[%s1423_s3] sm:$0xff] %v786_v57  ;;  %v787_v1 = vmax.f32 %v784_v58, 0.0  ;;  %v761_v2 = vmax.f32 %v1048_v59, %v1076_v60 }
 0x125   :  { %790 = vst [vmem:[%s1423_s3 + $0x8] sm:$0xff] %v787_v1  ;;  %v764_v4 = vmax.f32 %v758_v33, %v761_v2 }
 0x127   :  { %v785_v5 = vadd.f32 %v781_v3, %v764_v4 }
 0x129   :  { %v788_v6 = vmax.f32 %v785_v5, 0.0 }
 0x12b   :  { %791 = vst [vmem:[%s1423_s3 + $0x10] sm:$0xf] %v788_v6 }

</bundles_post_ra>
